<compile_context>
chip_gen: v6e
topology: v6e:2x2x1
jax: 0.10.0
libtpu: 0.0.40
codegen_flags: <defaults>
</compile_context>

<pallas_src>
import functools
import math

import jax
import jax.numpy as jnp
from jax import lax
from jax.experimental import pallas as pl
from jax.experimental.pallas import tpu as pltpu

LN_EPS = 1e-5
NEG_INF = -1e30
VMEM_LIMIT = 64 * 1024 * 1024   # > 32 MiB default scoped limit; fits all generations


def _layernorm(x, gamma, beta):
    mu = jnp.mean(x, axis=-1, keepdims=True)
    xc = x - mu
    var = jnp.mean(xc * xc, axis=-1, keepdims=True)
    return xc * lax.rsqrt(var + LN_EPS) * gamma + beta


def _const_spec(shape):
    """BlockSpec for a grid-constant operand (weights / LN params)."""
    ndim = len(shape)
    return pl.BlockSpec(shape, lambda *_args, _n=ndim: (0,) * _n)


# ---------------------------------------------------------------------------
# Kernel 1: fused QKV projection, head-major outputs.  grid = (S_tiles, B).
# ---------------------------------------------------------------------------
def qkv_kernel(x_ref, w_ref, b_ref, q_ref, k_ref, v_ref,
               *, nb_heads, d_k, d_v, scale):
    x = x_ref[0]                                     # (ts, D) f32
    xm = x.astype(w_ref.dtype)                       # matmul dtype (bf16 or f32)
    qkv = jnp.dot(xm, w_ref[...], preferred_element_type=jnp.float32) + b_ref[0]
    hk = nb_heads * d_k
    # Static per-head lane slices (128-aligned when d_k/d_v are multiples of 128);
    # writes q/k/v head-major so no XLA-side transpose is needed.
    for h in range(nb_heads):
        q_ref[0, h] = (qkv[:, h * d_k:(h + 1) * d_k] * scale).astype(q_ref.dtype)
        k_ref[0, h] = qkv[:, hk + h * d_k: hk + (h + 1) * d_k].astype(k_ref.dtype)
        v_ref[0, h] = qkv[:, 2 * hk + h * d_v: 2 * hk + (h + 1) * d_v].astype(v_ref.dtype)


def run_qkv(x, w_qkv, b_qkv, *, nb_heads, d_k, d_v, tile_s, out_dtype):
    B, S, D = x.shape
    assert S % tile_s == 0
    kernel = functools.partial(qkv_kernel, nb_heads=nb_heads, d_k=d_k, d_v=d_v,
                               scale=1.0 / math.sqrt(d_k))
    qk_out = pl.BlockSpec((1, nb_heads, tile_s, d_k), lambda s, b: (b, 0, s, 0))
    v_out = pl.BlockSpec((1, nb_heads, tile_s, d_v), lambda s, b: (b, 0, s, 0))
    return pl.pallas_call(
        kernel,
        out_shape=(jax.ShapeDtypeStruct((B, nb_heads, S, d_k), out_dtype),
                   jax.ShapeDtypeStruct((B, nb_heads, S, d_k), out_dtype),
                   jax.ShapeDtypeStruct((B, nb_heads, S, d_v), out_dtype)),
        grid=(S // tile_s, B),
        in_specs=[pl.BlockSpec((1, tile_s, D), lambda s, b: (b, s, 0)),
                  _const_spec(w_qkv.shape), _const_spec(b_qkv.shape)],
        out_specs=(qk_out, qk_out, v_out),
        compiler_params=pltpu.CompilerParams(
            dimension_semantics=("parallel", "parallel"),
            vmem_limit_bytes=VMEM_LIMIT),
    )(x, w_qkv, b_qkv)


# ---------------------------------------------------------------------------
# Kernel 2: flash-style causal attention + output projection + residual + LN1.
# grid = (q_tiles, B, kv_tiles); kv axis is the innermost "arbitrary" axis.
# ---------------------------------------------------------------------------
def attn_kernel(x_ref, q_ref, k_ref, v_ref, wo_ref, bo_ref, g1_ref, be1_ref,
                o_ref, m_sc, l_sc, acc_sc,
                *, tq, tkv, nb_heads, approx_recip):
    qi = pl.program_id(0)
    ki = pl.program_id(2)

    @pl.when(ki == 0)
    def _init():
        m_sc[...] = jnp.full(m_sc.shape, -jnp.inf, jnp.float32)
        l_sc[...] = jnp.zeros(l_sc.shape, jnp.float32)
        acc_sc[...] = jnp.zeros(acc_sc.shape, jnp.float32)

    def _scores():
        # q is pre-scaled by 1/sqrt(d_k) in the QKV kernel.
        return jnp.einsum("hqd,hkd->hqk", q_ref[0], k_ref[0],
                          preferred_element_type=jnp.float32)

    def _online_update(s):
        m_prev = m_sc[...]                                   # (H, tq, 1)
        m_new = jnp.maximum(m_prev, jnp.max(s, axis=-1, keepdims=True))
        alpha = jnp.exp(m_prev - m_new)
        p = jnp.exp(s - m_new)
        l_sc[...] = alpha * l_sc[...] + jnp.sum(p, axis=-1, keepdims=True)
        acc_sc[...] = alpha * acc_sc[...] + jnp.einsum(
            "hqk,hkv->hqv", p.astype(v_ref.dtype), v_ref[0],
            preferred_element_type=jnp.float32)
        m_sc[...] = m_new

    # Tile classification: strictly-below-diagonal tiles need no mask at all;
    # diagonal tiles need the iota mask; above-diagonal tiles are skipped
    # entirely (and their K/V DMA is also skipped via the clamped index_map).
    is_full = (ki * tkv + tkv - 1) <= (qi * tq)
    is_needed = (ki * tkv) <= (qi * tq + tq - 1)
    is_diag = jnp.logical_and(is_needed, jnp.logical_not(is_full))

    @pl.when(is_full)
    def _full_tile():
        _online_update(_scores())

    @pl.when(is_diag)
    def _diag_tile():
        s = _scores()
        row = qi * tq + lax.broadcasted_iota(jnp.int32, (tq, tkv), 0)
        col = ki * tkv + lax.broadcasted_iota(jnp.int32, (tq, tkv), 1)
        s = jnp.where((row >= col)[None, :, :], s, NEG_INF)
        _online_update(s)

    @pl.when(ki == pl.num_programs(2) - 1)
    def _finalize():
        d_model = x_ref.shape[2]
        ctx = acc_sc[...] * pl.reciprocal(l_sc[...], approx=approx_recip)
        mdt = wo_ref.dtype
        # Per-head output projection.  With tq = d_v = 128 each dot is a full
        # MXU tile and this runs once per (q tile, batch), not per kv step.
        attn_out = jnp.zeros((tq, d_model), jnp.float32)
        for h in range(nb_heads):
            attn_out = attn_out + jnp.dot(ctx[h].astype(mdt), wo_ref[h],
                                          preferred_element_type=jnp.float32)
        attn_out = attn_out + bo_ref[0]
        o_ref[0] = _layernorm(x_ref[0] + attn_out, g1_ref[0], be1_ref[0])


def run_attention(x, q, k, v, wo_hm, bo, g1, be1, *, tile_q, tile_kv, approx_recip):
    B, S, D = x.shape
    assert S % tile_q == 0 and S % tile_kv == 0
    H, d_k, d_v = q.shape[1], q.shape[3], v.shape[3]

    def kv_index(qi, b, ki):
        # Causal DMA pruning: kv tiles strictly above the diagonal are clamped
        # to the last tile this q tile actually needs, so the resident block is
        # reused and no new HBM->VMEM copy is issued for pruned steps.
        max_ki = (qi * tile_q + tile_q - 1) // tile_kv
        return (b, 0, jnp.minimum(ki, max_ki), 0)

    kernel = functools.partial(attn_kernel, tq=tile_q, tkv=tile_kv,
                               nb_heads=H, approx_recip=approx_recip)
    in_specs = [
        pl.BlockSpec((1, tile_q, D), lambda qi, b, ki: (b, qi, 0)),
        pl.BlockSpec((1, H, tile_q, d_k), lambda qi, b, ki: (b, 0, qi, 0)),
        pl.BlockSpec((1, H, tile_kv, d_k), kv_index),
        pl.BlockSpec((1, H, tile_kv, d_v), kv_index),
        _const_spec(wo_hm.shape), _const_spec(bo.shape),
        _const_spec(g1.shape), _const_spec(be1.shape),
    ]
    return pl.pallas_call(
        kernel,
        out_shape=jax.ShapeDtypeStruct((B, S, D), jnp.float32),
        grid=(S // tile_q, B, S // tile_kv),
        in_specs=in_specs,
        out_specs=pl.BlockSpec((1, tile_q, D), lambda qi, b, ki: (b, qi, 0)),
        scratch_shapes=[pltpu.VMEM((H, tile_q, 1), jnp.float32),
                        pltpu.VMEM((H, tile_q, 1), jnp.float32),
                        pltpu.VMEM((H, tile_q, d_v), jnp.float32)],
        compiler_params=pltpu.CompilerParams(
            dimension_semantics=("parallel", "parallel", "arbitrary"),
            vmem_limit_bytes=VMEM_LIMIT),
    )(x, q, k, v, wo_hm, bo, g1, be1)


# ---------------------------------------------------------------------------
# Kernel 3: FFN tiled over d_ff (accumulator) + residual + LN2.
# grid = (S_tiles, B, ff_tiles), ff axis "arbitrary".
# ---------------------------------------------------------------------------
def ffn_kernel(h1_ref, w1_ref, b1_ref, w2_ref, b2_ref, g2_ref, be2_ref,
               o_ref, acc_sc, h1c_sc):
    fi = pl.program_id(2)

    @pl.when(fi == 0)
    def _init():
        acc_sc[...] = jnp.zeros(acc_sc.shape, jnp.float32)
        h1c_sc[...] = h1_ref[0].astype(h1c_sc.dtype)   # cast once per row tile

    t = jnp.dot(h1c_sc[...], w1_ref[...],
                preferred_element_type=jnp.float32) + b1_ref[0]
    t = jax.nn.gelu(t, approximate=False)              # exact erf, as nn.GELU()
    acc_sc[...] += jnp.dot(t.astype(w2_ref.dtype), w2_ref[...],
                           preferred_element_type=jnp.float32)

    @pl.when(fi == pl.num_programs(2) - 1)
    def _finalize():
        ff = acc_sc[...] + b2_ref[0]
        o_ref[0] = _layernorm(h1_ref[0] + ff, g2_ref[0], be2_ref[0])


def run_ffn(h1, w1, b1, w2, b2, g2, be2, *, tile_s, tile_ff):
    B, S, D = h1.shape
    F = w1.shape[1]
    mdt = w1.dtype
    assert S % tile_s == 0 and F % tile_ff == 0
    in_specs = [
        pl.BlockSpec((1, tile_s, D), lambda s, b, f: (b, s, 0)),
        pl.BlockSpec((D, tile_ff), lambda s, b, f: (0, f)),
        pl.BlockSpec((1, tile_ff), lambda s, b, f: (0, f)),
        pl.BlockSpec((tile_ff, D), lambda s, b, f: (f, 0)),
        _const_spec(b2.shape), _const_spec(g2.shape), _const_spec(be2.shape),
    ]
    return pl.pallas_call(
        ffn_kernel,
        out_shape=jax.ShapeDtypeStruct((B, S, D), jnp.float32),
        grid=(S // tile_s, B, F // tile_ff),
        in_specs=in_specs,
        out_specs=pl.BlockSpec((1, tile_s, D), lambda s, b, f: (b, s, 0)),
        scratch_shapes=[pltpu.VMEM((tile_s, D), jnp.float32),
                        pltpu.VMEM((tile_s, D), mdt)],
        compiler_params=pltpu.CompilerParams(
            dimension_semantics=("parallel", "parallel", "arbitrary"),
            vmem_limit_bytes=VMEM_LIMIT),
    )(h1, w1, b1, w2, b2, g2, be2)


# ---------------------------------------------------------------------------
# Kernel 4: final LayerNorm (computed once per row tile) + vocab projection.
# grid = (S_tiles, B, V_tiles), vocab axis "arbitrary" so the LN scratch persists.
# ---------------------------------------------------------------------------
def head_kernel(x_ref, g_ref, b_ref, wf_ref, bf_ref, o_ref, xn_sc):
    vi = pl.program_id(2)

    @pl.when(vi == 0)
    def _ln_once():
        xn_sc[...] = _layernorm(x_ref[0], g_ref[0], b_ref[0]).astype(xn_sc.dtype)

    o_ref[0] = (jnp.dot(xn_sc[...], wf_ref[...],
                        preferred_element_type=jnp.float32)
                + bf_ref[0]).astype(o_ref.dtype)


def run_head(x, g, b, wf, bf, *, tile_s, tile_v, out_dtype=jnp.float32):
    # TODO(synk): out_dtype=bf16 halves logits HBM traffic for large vocabularies.
    B, S, D = x.shape
    V = wf.shape[1]
    mdt = wf.dtype
    assert S % tile_s == 0 and V % tile_v == 0
    in_specs = [
        pl.BlockSpec((1, tile_s, D), lambda s, bb, v: (bb, s, 0)),
        _const_spec(g.shape), _const_spec(b.shape),
        pl.BlockSpec((D, tile_v), lambda s, bb, v: (0, v)),
        pl.BlockSpec((1, tile_v), lambda s, bb, v: (0, v)),
    ]
    return pl.pallas_call(
        head_kernel,
        out_shape=jax.ShapeDtypeStruct((B, S, V), out_dtype),
        grid=(S // tile_s, B, V // tile_v),
        in_specs=in_specs,
        out_specs=pl.BlockSpec((1, tile_s, tile_v), lambda s, bb, v: (bb, s, v)),
        scratch_shapes=[pltpu.VMEM((tile_s, D), mdt)],
        compiler_params=pltpu.CompilerParams(
            dimension_semantics=("parallel", "parallel", "arbitrary"),
            vmem_limit_bytes=VMEM_LIMIT),
    )(x, g, b, wf, bf)


# ---------------------------------------------------------------------------
# Parameter init + glue (embedding lookup, positional encoding)
# ---------------------------------------------------------------------------
def make_positional_encoding(max_len, d_model):
    pos = jnp.arange(max_len, dtype=jnp.float32)[:, None]
    div = jnp.exp(jnp.arange(0, d_model, 2, dtype=jnp.float32)
                  * (-math.log(10000.0) / d_model))
    pe = jnp.zeros((max_len, d_model), dtype=jnp.float32)
    pe = pe.at[:, 0::2].set(jnp.sin(pos * div))
    pe = pe.at[:, 1::2].set(jnp.cos(pos * div))
    return pe


def init_params(key, *, d_k, d_v, d_model, nb_heads, nb_layers, vocab_size, d_ff):
    keys = iter(jax.random.split(key, 8 + 16 * nb_layers))

    def nrm(shape, scale=0.02):
        return (scale * jax.random.normal(next(keys), shape)).astype(jnp.float32)

    hk, hv = nb_heads * d_k, nb_heads * d_v
    emb = nrm((vocab_size, d_model))
    blocks = []
    for _ in range(nb_layers):
        blocks.append({
            "wq": nrm((d_model, hk)), "bq": nrm((1, hk)),
            "wk": nrm((d_model, hk)), "bk": nrm((1, hk)),
            "wv": nrm((d_model, hv)), "bv": nrm((1, hv)),
            "wo": nrm((hv, d_model)), "bo": nrm((1, d_model)),
            "g1": 1.0 + nrm((1, d_model), 0.1), "be1": nrm((1, d_model), 0.1),
            "w1": nrm((d_model, d_ff)), "b1": nrm((1, d_ff)),
            "w2": nrm((d_ff, d_model)), "b2": nrm((1, d_model)),
            "g2": 1.0 + nrm((1, d_model), 0.1), "be2": nrm((1, d_model), 0.1),
        })
    return {"emb": emb, "blocks": blocks,
            "gf": 1.0 + nrm((1, d_model), 0.1), "bf_ln": nrm((1, d_model), 0.1),
            "wf": nrm((d_model, vocab_size)), "bf": nrm((1, vocab_size))}


def decoder_forward(tokens, params, pe, *, nb_heads, d_k, d_v,
                    matmul_dtype=jnp.bfloat16,
                    tile_s=128, tile_q=128, tile_kv=128, tile_ff=512, tile_v=512):
    """Embedding + PE (XLA glue, dropout = identity), then Pallas kernels."""
    B, S = tokens.shape
    D = params["emb"].shape[1]
    F = params["blocks"][0]["w1"].shape[1] if params["blocks"] else tile_ff
    V = params["wf"].shape[1]
    mdt = matmul_dtype
    approx_recip = (mdt != jnp.float32)

    # Defensive clamps for small test shapes; real configs should pass
    # tile sizes that divide S / d_ff / V exactly.
    tile_s, tile_q, tile_kv = min(tile_s, S), min(tile_q, S), min(tile_kv, S)
    tile_ff, tile_v = min(tile_ff, F), min(tile_v, V)

    x = params["emb"][tokens] + pe[None, :S, :]                  # (B, S, D) f32
    for p in params["blocks"]:
        # Fused QKV weight / bias (wrapper-side layout plumbing, not compute).
        w_qkv = jnp.concatenate([p["wq"], p["wk"], p["wv"]], axis=1).astype(mdt)
        b_qkv = jnp.concatenate([p["bq"], p["bk"], p["bv"]], axis=1)
        q, k, v = run_qkv(x, w_qkv, b_qkv, nb_heads=nb_heads, d_k=d_k, d_v=d_v,
                          tile_s=tile_s, out_dtype=mdt)
        wo_hm = p["wo"].reshape(nb_heads, d_v, D).astype(mdt)    # head-major W_o
        h1 = run_attention(x, q, k, v, wo_hm, p["bo"], p["g1"], p["be1"],
                           tile_q=tile_q, tile_kv=tile_kv,
                           approx_recip=approx_recip)
        x = run_ffn(h1, p["w1"].astype(mdt), p["b1"], p["w2"].astype(mdt),
                    p["b2"], p["g2"], p["be2"], tile_s=tile_s, tile_ff=tile_ff)
    return run_head(x, params["gf"], params["bf_ln"],
                    params["wf"].astype(mdt), params["bf"],
                    tile_s=tile_s, tile_v=tile_v)


# ---------------------------------------------------------------------------
# Pure-JAX reference (mirrors PyTorch forward, eval mode) for validation
# ---------------------------------------------------------------------------
def reference_forward(tokens, params, pe, *, nb_heads, d_k, d_v):
    B, S = tokens.shape
    x = params["emb"][tokens] + pe[None, :S, :]
    causal = jnp.tril(jnp.ones((S, S), bool))
    for p in params["blocks"]:
        q = (x @ p["wq"] + p["bq"][0]).reshape(B, S, nb_heads, d_k).transpose(0, 2, 1, 3)
        k = (x @ p["wk"] + p["bk"][0]).reshape(B, S, nb_heads, d_k).transpose(0, 2, 1, 3)
        v = (x @ p["wv"] + p["bv"][0]).reshape(B, S, nb_heads, d_v).transpose(0, 2, 1, 3)
        a = jnp.einsum("bhqd,bhkd->bhqk", q, k) / math.sqrt(d_k)
        a = jnp.where(causal[None, None], a, NEG_INF)
        a = jax.nn.softmax(a, axis=-1)
        o = jnp.einsum("bhqk,bhkd->bhqd", a, v).transpose(0, 2, 1, 3).reshape(B, S, -1)
        attn_out = o @ p["wo"] + p["bo"][0]
        h1 = _layernorm(x + attn_out, p["g1"][0], p["be1"][0])
        ff = jax.nn.gelu(h1 @ p["w1"] + p["b1"][0], approximate=False) @ p["w2"] + p["b2"][0]
        x = _layernorm(h1 + ff, p["g2"][0], p["be2"][0])
    xn = _layernorm(x, params["gf"][0], params["bf_ln"][0])
    return xn @ params["wf"] + params["bf"][0]


if __name__ == "__main__":
    # Small but tile-exercising config: S=256 with 128-row tiles gives 2x2 causal
    # kv grids (tests pruning + DMA clamping), 2 ff tiles and 2 vocab tiles
    # (tests the accumulator / hoisted-LN paths).  d_k = d_v = 128 keeps every
    # per-head slice lane-aligned and every matmul a full MXU tile.
    B, S = 2, 256
    d_model, nb_heads, d_k, d_v = 128, 2, 128, 128
    nb_layers, vocab_size, max_len = 2, 512, 512
    d_ff = 512

    key = jax.random.PRNGKey(0)
    k_par, k_tok = jax.random.split(key)
    params = init_params(k_par, d_k=d_k, d_v=d_v, d_model=d_model,
                         nb_heads=nb_heads, nb_layers=nb_layers,
                         vocab_size=vocab_size, d_ff=d_ff)
    pe = make_positional_encoding(max_len, d_model)
    tokens = jax.random.randint(k_tok, (B, S), 0, vocab_size, dtype=jnp.int32)

    common = dict(nb_heads=nb_heads, d_k=d_k, d_v=d_v,
                  tile_s=128, tile_q=128, tile_kv=128, tile_ff=256, tile_v=256)

    ref = reference_forward(tokens, params, pe,
                            nb_heads=nb_heads, d_k=d_k, d_v=d_v)

    # 1) f32 MXU path — tight structural validation against the f32 reference.
    out_f32 = jax.block_until_ready(
        decoder_forward(tokens, params, pe, matmul_dtype=jnp.float32, **common))
    assert out_f32.shape == (B, S, vocab_size)
    assert jnp.allclose(out_f32, ref, atol=2e-3, rtol=2e-3), "f32 path mismatch"

    # 2) bf16 MXU path (perf mode: bf16 operands, f32 accumulation, approx
    #    reciprocal) — relaxed tolerance for the reduced-precision matmuls.
    out_bf16 = jax.block_until_ready(
        decoder_forward(tokens, params, pe, matmul_dtype=jnp.bfloat16, **common))
    assert out_bf16.shape == (B, S, vocab_size)
    assert jnp.allclose(out_bf16, ref, atol=5e-2, rtol=5e-2), "bf16 path mismatch"

    print("KERNEL_OK")
</pallas_src>

<mosaic_0001>
module attributes {stable_mosaic.version = 11 : i64} {
  func.func @qkv_kernel(%arg0: i32, %arg1: i32, %arg2: memref<1x128x128xf32, #tpu.memory_space<vmem>>, %arg3: memref<128x768xf32, #tpu.memory_space<vmem>>, %arg4: memref<1x768xf32, #tpu.memory_space<vmem>>, %arg5: memref<1x2x128x128xf32, #tpu.memory_space<vmem>>, %arg6: memref<1x2x128x128xf32, #tpu.memory_space<vmem>>, %arg7: memref<1x2x128x128xf32, #tpu.memory_space<vmem>>) attributes {dimension_semantics = [#tpu.dimension_semantics<parallel>, #tpu.dimension_semantics<parallel>], iteration_bounds = array<i64: 2, 2>, scalar_prefetch = 0 : i64, scratch_operands = 0 : i64, tpu.core_type = #tpu.core_type<tc>, window_params = [{transform_indices = @transform_0, window_bounds = array<i64: 1, 128, 128>}, {pipeline_mode = #tpu.pipeline_mode<synchronous>, transform_indices = @transform_1, window_bounds = array<i64: 128, 768>}, {pipeline_mode = #tpu.pipeline_mode<synchronous>, transform_indices = @transform_2, window_bounds = array<i64: 1, 768>}, {transform_indices = @transform_3, window_bounds = array<i64: 1, 2, 128, 128>}, {transform_indices = @transform_4, window_bounds = array<i64: 1, 2, 128, 128>}, {transform_indices = @transform_5, window_bounds = array<i64: 1, 2, 128, 128>}]} {
    %c0 = arith.constant 0 : index
    %c0_0 = arith.constant 0 : index
    %c0_1 = arith.constant 0 : index
    %0 = vector.load %arg2[%c0, %c0_0, %c0_1] : memref<1x128x128xf32, #tpu.memory_space<vmem>>, vector<1x128x128xf32>
    %1 = vector.shape_cast %0 : vector<1x128x128xf32> to vector<128x128xf32>
    %c0_2 = arith.constant 0 : index
    %c0_3 = arith.constant 0 : index
    %2 = vector.load %arg3[%c0_2, %c0_3] : memref<128x768xf32, #tpu.memory_space<vmem>>, vector<128x768xf32>
    %cst = arith.constant dense<0.000000e+00> : vector<128x768xf32>
    %3 = tpu.matmul %1, %2, %cst {dimension_numbers = #tpu.dot_dimension_numbers<[1], [0], [0], [1], [0, 0, 1, 1], [], []>} : vector<128x128xf32>, vector<128x768xf32>, vector<128x768xf32> -> vector<128x768xf32>
    %c0_4 = arith.constant 0 : index
    %c0_5 = arith.constant 0 : index
    %4 = vector.load %arg4[%c0_4, %c0_5] : memref<1x768xf32, #tpu.memory_space<vmem>>, vector<1x768xf32>
    %5 = vector.shape_cast %4 : vector<1x768xf32> to vector<768xf32>
    %6 = vector.shape_cast %5 : vector<768xf32> to vector<1x768xf32>
    %7 = vector.broadcast %6 : vector<1x768xf32> to vector<128x768xf32>
    %8 = arith.addf %3, %7 : vector<128x768xf32>
    %9 = vector.extract_strided_slice %8 {offsets = [0, 0], sizes = [128, 128], strides = [1, 1]} : vector<128x768xf32> to vector<128x128xf32>
    %cst_6 = arith.constant 0.0883883461 : f32
    %10 = vector.broadcast %cst_6 : f32 to vector<128x128xf32>
    %11 = arith.mulf %9, %10 : vector<128x128xf32>
    %c0_7 = arith.constant 0 : index
    %c0_8 = arith.constant 0 : index
    %c0_9 = arith.constant 0 : index
    %c0_10 = arith.constant 0 : index
    %12 = vector.load %arg5[%c0_7, %c0_8, %c0_9, %c0_10] : memref<1x2x128x128xf32, #tpu.memory_space<vmem>>, vector<1x1x128x128xf32>
    %13 = vector.shape_cast %12 : vector<1x1x128x128xf32> to vector<128x128xf32>
    %14 = vector.shape_cast %11 : vector<128x128xf32> to vector<1x1x128x128xf32>
    tpu.vector_store %arg5[%c0_7, %c0_8, %c0_9, %c0_10], %14 {strides = array<i32>} : memref<1x2x128x128xf32, #tpu.memory_space<vmem>>, vector<1x1x128x128xf32>,
    %15 = vector.extract_strided_slice %8 {offsets = [0, 256], sizes = [128, 128], strides = [1, 1]} : vector<128x768xf32> to vector<128x128xf32>
    %c0_11 = arith.constant 0 : index
    %c0_12 = arith.constant 0 : index
    %c0_13 = arith.constant 0 : index
    %c0_14 = arith.constant 0 : index
    %16 = vector.load %arg6[%c0_11, %c0_12, %c0_13, %c0_14] : memref<1x2x128x128xf32, #tpu.memory_space<vmem>>, vector<1x1x128x128xf32>
    %17 = vector.shape_cast %16 : vector<1x1x128x128xf32> to vector<128x128xf32>
    %18 = vector.shape_cast %15 : vector<128x128xf32> to vector<1x1x128x128xf32>
    tpu.vector_store %arg6[%c0_11, %c0_12, %c0_13, %c0_14], %18 {strides = array<i32>} : memref<1x2x128x128xf32, #tpu.memory_space<vmem>>, vector<1x1x128x128xf32>,
    %19 = vector.extract_strided_slice %8 {offsets = [0, 512], sizes = [128, 128], strides = [1, 1]} : vector<128x768xf32> to vector<128x128xf32>
    %c0_15 = arith.constant 0 : index
    %c0_16 = arith.constant 0 : index
    %c0_17 = arith.constant 0 : index
    %c0_18 = arith.constant 0 : index
    %20 = vector.load %arg7[%c0_15, %c0_16, %c0_17, %c0_18] : memref<1x2x128x128xf32, #tpu.memory_space<vmem>>, vector<1x1x128x128xf32>
    %21 = vector.shape_cast %20 : vector<1x1x128x128xf32> to vector<128x128xf32>
    %22 = vector.shape_cast %19 : vector<128x128xf32> to vector<1x1x128x128xf32>
    tpu.vector_store %arg7[%c0_15, %c0_16, %c0_17, %c0_18], %22 {strides = array<i32>} : memref<1x2x128x128xf32, #tpu.memory_space<vmem>>, vector<1x1x128x128xf32>,
    %23 = vector.extract_strided_slice %8 {offsets = [0, 128], sizes = [128, 128], strides = [1, 1]} : vector<128x768xf32> to vector<128x128xf32>
    %cst_19 = arith.constant 0.0883883461 : f32
    %24 = vector.broadcast %cst_19 : f32 to vector<128x128xf32>
    %25 = arith.mulf %23, %24 : vector<128x128xf32>
    %c0_20 = arith.constant 0 : index
    %c1 = arith.constant 1 : index
    %c0_21 = arith.constant 0 : index
    %c0_22 = arith.constant 0 : index
    %26 = vector.load %arg5[%c0_20, %c1, %c0_21, %c0_22] : memref<1x2x128x128xf32, #tpu.memory_space<vmem>>, vector<1x1x128x128xf32>
    %27 = vector.shape_cast %26 : vector<1x1x128x128xf32> to vector<128x128xf32>
    %28 = vector.shape_cast %25 : vector<128x128xf32> to vector<1x1x128x128xf32>
    tpu.vector_store %arg5[%c0_20, %c1, %c0_21, %c0_22], %28 {strides = array<i32>} : memref<1x2x128x128xf32, #tpu.memory_space<vmem>>, vector<1x1x128x128xf32>,
    %29 = vector.extract_strided_slice %8 {offsets = [0, 384], sizes = [128, 128], strides = [1, 1]} : vector<128x768xf32> to vector<128x128xf32>
    %c0_23 = arith.constant 0 : index
    %c1_24 = arith.constant 1 : index
    %c0_25 = arith.constant 0 : index
    %c0_26 = arith.constant 0 : index
    %30 = vector.load %arg6[%c0_23, %c1_24, %c0_25, %c0_26] : memref<1x2x128x128xf32, #tpu.memory_space<vmem>>, vector<1x1x128x128xf32>
    %31 = vector.shape_cast %30 : vector<1x1x128x128xf32> to vector<128x128xf32>
    %32 = vector.shape_cast %29 : vector<128x128xf32> to vector<1x1x128x128xf32>
    tpu.vector_store %arg6[%c0_23, %c1_24, %c0_25, %c0_26], %32 {strides = array<i32>} : memref<1x2x128x128xf32, #tpu.memory_space<vmem>>, vector<1x1x128x128xf32>,
    %33 = vector.extract_strided_slice %8 {offsets = [0, 640], sizes = [128, 128], strides = [1, 1]} : vector<128x768xf32> to vector<128x128xf32>
    %c0_27 = arith.constant 0 : index
    %c1_28 = arith.constant 1 : index
    %c0_29 = arith.constant 0 : index
    %c0_30 = arith.constant 0 : index
    %34 = vector.load %arg7[%c0_27, %c1_28, %c0_29, %c0_30] : memref<1x2x128x128xf32, #tpu.memory_space<vmem>>, vector<1x1x128x128xf32>
    %35 = vector.shape_cast %34 : vector<1x1x128x128xf32> to vector<128x128xf32>
    %36 = vector.shape_cast %33 : vector<128x128xf32> to vector<1x1x128x128xf32>
    tpu.vector_store %arg7[%c0_27, %c1_28, %c0_29, %c0_30], %36 {strides = array<i32>} : memref<1x2x128x128xf32, #tpu.memory_space<vmem>>, vector<1x1x128x128xf32>,
    return
  }
  func.func @transform_0(%arg0: i32, %arg1: i32) -> (i32, i32, i32) {
    %c0_i32 = arith.constant 0 : i32
    %c0_i32_0 = arith.constant 0 : i32
    return %arg1, %arg0, %c0_i32 : i32, i32, i32
  }
  func.func @transform_1(%arg0: i32, %arg1: i32) -> (i32, i32) {
    %c0_i32 = arith.constant 0 : i32
    %c0_i32_0 = arith.constant 0 : i32
    %c0_i32_1 = arith.constant 0 : i32
    return %c0_i32, %c0_i32_0 : i32, i32
  }
  func.func @transform_2(%arg0: i32, %arg1: i32) -> (i32, i32) {
    %c0_i32 = arith.constant 0 : i32
    %c0_i32_0 = arith.constant 0 : i32
    %c0_i32_1 = arith.constant 0 : i32
    return %c0_i32, %c0_i32_0 : i32, i32
  }
  func.func @transform_3(%arg0: i32, %arg1: i32) -> (i32, i32, i32, i32) {
    %c0_i32 = arith.constant 0 : i32
    %c0_i32_0 = arith.constant 0 : i32
    %c0_i32_1 = arith.constant 0 : i32
    return %arg1, %c0_i32, %arg0, %c0_i32_0 : i32, i32, i32, i32
  }
  func.func @transform_4(%arg0: i32, %arg1: i32) -> (i32, i32, i32, i32) {
    %c0_i32 = arith.constant 0 : i32
    %c0_i32_0 = arith.constant 0 : i32
    %c0_i32_1 = arith.constant 0 : i32
    return %arg1, %c0_i32, %arg0, %c0_i32_0 : i32, i32, i32, i32
  }
  func.func @transform_5(%arg0: i32, %arg1: i32) -> (i32, i32, i32, i32) {
    %c0_i32 = arith.constant 0 : i32
    %c0_i32_0 = arith.constant 0 : i32
    %c0_i32_1 = arith.constant 0 : i32
    return %arg1, %c0_i32, %arg0, %c0_i32_0 : i32, i32, i32, i32
  }
}

</mosaic_0001>

<bundles_post_ra>
// kernel: tpu_custom_call.1
= control target key start
LH: loop header
LB: loop body
LE: loop exit
PB: predicated region body
PF: predicated region fallthrough
CT: control target
= control target key end

     0   :  { %s2488_s0 = inlined_call_operand.hbm [shape: f32[2,256,128], index: 0, kind: input, shape index: {}]   ;;  %s2489_s1 = inlined_call_operand.hbm [shape: f32[128,768], index: 1, kind: input, shape index: {}]   ;;  %s2490_s2 = inlined_call_operand.hbm [shape: f32[1,768], index: 2, kind: input, shape index: {}]   ;;  %s2491_s3 = inlined_call_operand.hbm [shape: f32[2,2,256,128], index: 3, kind: output, shape index: {0}]   ;;  %s2492_s4 = inlined_call_operand.hbm [shape: f32[2,2,256,128], index: 4, kind: output, shape index: {1}]   ;;  %s2493_s5 = inlined_call_operand.hbm [shape: f32[2,2,256,128], index: 5, kind: output, shape index: {2}]  }
   0x1   :  { %2499 = sst [smem:[#allocation25_spill]] %s2489_s1 }
   0x2   :  { %2500 = sst [smem:[#allocation26_spill]] %s2490_s2 }
   0x3   :  { %2501 = sst [smem:[#allocation27_spill]] %s2491_s3 }
   0x4   :  { %2502 = sst [smem:[#allocation28_spill]] %s2492_s4 }
   0x5   :  { %2503 = sst [smem:[#allocation29_spill]] %s2493_s5 }
   0x6   :  { %11 = vsyncpa [#allocation3], 0 }
   0x7   :  { %13 = vsyncpa [#allocation3 + $0x1], 0 }
   0x8   :  { %14 = vsyncpa [#allocation6], 0 }
   0x9   :  { %15 = vsyncpa [#allocation4], 0 }
   0xa   :  { %17 = vsyncpa [#allocation4 + $0x1], 0 }
   0xb   :  { %18 = vsyncpa [#allocation10], 0 }
   0xc   :  { %20 = vsyncpa [#allocation10 + $0x1], 0  ;;  %s1862_s18 = smov 0   ;;  %s1864_s19 = smov 0  }
   0xd   :  { %s1866_s20 = smov 0   ;;  %s1868_s21 = smov 0  }
   0xe   :  { %s1870_s22 = smov 0   ;;  %s1872_s23 = smov 0  }
   0xf   :  { %s1874_s24 = smov 0   ;;  %s1876_s25 = smov 0  }
  0x10 LB: > { %2504 = sst [smem:[#allocation22_spill]] %s1773_s18  ;;  %s1903_s26 = sadd.s32 4294967295, %s1801_s25   ;;  %s1801_s25 = sphi %s1876_s25, %s26_s25   ;;  %s1797_s24 = sphi %s1874_s24, %s2533_s24   ;;  %s1793_s23 = sphi %s1872_s23, %s2532_s23   ;;  %s1789_s22 = sphi %s1870_s22, %s2531_s22   ;;  %s1785_s21 = sphi %s1868_s21, %s2530_s21   ;;  %s1781_s20 = sphi %s1866_s20, %s2529_s20   ;;  %s1777_s19 = sphi %s1864_s19, %s2528_s19   ;;  %s1773_s18 = sphi %s1862_s18, %s2527_s18  }
  0x11   : > { %s2495_s27 = sadd.s32 4294967294, %s1801_s25   ;;  %p60_p0 = scmp.ne.s32.totalorder %s1777_s19, %s1773_s18 }
  0x12   : > { %p2494_p1 = scmp.eq.s32.totalorder %s1903_s26, 0  ;;  %p134_p3 = scmp.eq.s32.totalorder %s2495_s27, 3 }
  0x13   : > { %p1381_p5 = scmp.ge.s32.totalorder %s1801_s25, 1  ;;  %p197_p7 = scmp.lt.s32.totalorder %s1801_s25, 5 }
  0x14   : > { %p1914_p4 = por %p2494_p1, %p60_p0  ;;  %p1919_p6 = por %p134_p3, %p60_p0 }
  0x15   : > { %p1924_p8 = pnand %p1381_p5, %p197_p7  ;;  %s1803_s6 = smov [#allocation5]  }
  0x16   : > { %s2506_s29 = scalar_select %p1919_p6, 1, 0 }
  0x17   : > { %s209_s7 = sshll.u32 %s1803_s6, 4  ;;  %p1524_p9 = pneg %p1924_p8  ;;  %s210_s7 = int_to_ptr.vmem [resolvable:$true] %s209_s7 }
  0x18   : > { %2507 = sst [smem:[#allocation23_spill]] %s2506_s29  ;;  %s1804_s9 = smov [#allocation7]  }
  0x19   : > { %p1932_p10 = pnand %p1524_p9, %p2494_p1  ;;  %s223_s10 = sshll.u32 %s1804_s9, 4  ;;  %s224_s10 = int_to_ptr.vmem [resolvable:$true] %s223_s10 }
  0x1a   : > { %s1654_s11 = scalar_lea.vmem %s210_s7, 12288  ;;  %p1662_p3 = scmp.lt.s32.totalorder %s210_s7, %s210_s7 }
  0x1b   : > { %p1645_p11 = pneg %p1932_p10  ;;  %p1655_p12 = scmp.ne.s32.totalorder %s210_s7, %s1654_s11 }
  0x1c   : > { %p1663_p5 = scmp.lt.s32.totalorder %s1654_s11, %s1654_s11 }
  0x1d   : > { %p1657_p13 = pnand %p1655_p12, %p1645_p11 }
  0x1e   : > { %p1664_p7 = por %p1663_p5, %p1662_p3 }
  0x1f   : > { %p1658_p0 = pneg %p1657_p13 }
  0x21   : > { %p1665_p9 = pnand %p1664_p7, %p1658_p0 }
  0x23   : > { %1668 = shalt.err (!%p1665_p9)
}
  0x24   : > { %s1805_s12 = smov 768   ;;  %s1806_s13 = smov 48  }
  0x25   : > { %s2510_s1 = sld [smem:[#allocation25_spill]]  ;;  %s1680_s16 = scalar_lea.vmem %s224_s10, 96 }
  0x26   : > { %p1681_p1 = scmp.ne.s32.totalorder %s224_s10, %s1680_s16  ;;  %p1688_p2 = scmp.lt.s32.totalorder %s224_s10, %s224_s10 }
  0x27   : > { %p1689_p6 = scmp.lt.s32.totalorder %s1680_s16, %s1680_s16 }
  0x28   : > { %p1683_p12 = pnand %p1681_p1, %p1645_p11 }
  0x29   : > { %p1690_p3 = por %p1689_p6, %p1688_p2 }
  0x2a   : > { %p1684_p13 = pneg %p1683_p12 }
  0x2b   : > { %1527 = dma.hbm_to_vmem [thread:$0]  (!%p1932_p10), %s2510_s1, 12288, %s210_s7, [#allocation6], %s1805_s12, %s1805_s12, %s1806_s13  }
  0x2c   : > { %p1691_p0 = pnand %p1690_p3, %p1684_p13 }
  0x2e   : > { %1694 = shalt.err (!%p1691_p0)
}
  0x2f   : > { %s2511_s2 = sld [smem:[#allocation26_spill]]  ;;  %s35_s7 = sadd.s32 1, %s1793_s23 }
  0x30   : > { %s38_s9 = sadd.s32 1, %s1797_s24  ;;  %p36_p1 = scmp.ge.s32.totalorder %s35_s7, 2 }
  0x31   : > { %s47_s8 = sadd.s32 1, %s1781_s20  ;;  %p54_p2 = scmp.ne.s32.totalorder %s1781_s20, %s1777_s19 }
  0x32   : > { %p55_p6 = scmp.eq.s32.totalorder %s1801_s25, 0  ;;  %s2535_s7 = smov (%p36_p1, %s35_s7), 0 }
  0x33   : > { %2512 = sst [smem:[#allocation24_spill]] %s2535_s7  ;;  %s2537_s9 = smov (!%p36_p1, %s38_s9), %s1797_s24 }
  0x34   : > { %s42_s11 = ssub.s32 %s1793_s23, %s2535_s7  ;;  %p1965_p11 = por %p55_p6, %p54_p2 }
  0x35   : > { %1530 = dma.hbm_to_vmem [thread:$0]  (!%p1932_p10), %s2511_s2, 96, %s224_s10, [#allocation6]  }
  0x36   : > { %p40_p10 = scmp.ge.s32.totalorder %s2537_s9, 2  ;;  %p2514_p5 = scmp.eq.s32.totalorder %s1903_s26, 3 }
  0x37   : > { %p1547_p9 = scmp.lt.s32.totalorder %s1801_s25, 4  ;;  %s234_s13 = sand.u32 1, %s1781_s20  }
  0x38   : > { %p1971_p7 = por %p2514_p5, %p54_p2  ;;  %s2539_s9 = smov (%p40_p10, %s2537_s9), 0 }
  0x39   : > { %s1385_s14 = sshll.u32 %s234_s13, 7  ;;  %s43_s15 = ssub.s32 %s1797_s24, %s2539_s9 }
  0x3a   : > { %s44_s16 = sor.u32 %s43_s15, %s42_s11  ;;  %s1386_s17 = sshll.u32 %s1797_s24, 4 }
  0x3b   : > { %p45_p12 = scmp.eq.s32.totalorder %s44_s16, 0  ;;  %s1387_s6 = sshll.u32 %s1793_s23, 5 }
  0x3c   : > { %s244_s27 = sadd.s32 %s1387_s6, %s1386_s17  ;;  %s238_s1 = scalar_lea.vmem [#allocation2], %s1385_s14 }
  0x3d   : > { %s247_s2 = sshll.u32 %s238_s1, 4  ;;  %s1388_s29 = sshll.u32 %s244_s27, 7  ;;  %s248_s2 = int_to_ptr.vmem [resolvable:$true] %s247_s2 }
  0x3e   : > { %s1984_s7 = scalar_select %p45_p12, %s1781_s20, %s47_s8  }
  0x3f   : > { %s246_s4 = scalar_lea.hbm %s2488_s0, %s1388_s29  ;;  %p1993_p13 = pnand %p1547_p9, %p1965_p11 }
  0x40   : > { %s235_s11 = scalar_lea.sflag [#allocation3], %s234_s13  ;;  %s1708_s14 = scalar_lea.vmem %s248_s2, 2048 }
  0x41   : > { %p1697_p3 = pneg %p1993_p13  ;;  %p1709_p0 = scmp.ne.s32.totalorder %s248_s2, %s1708_s14 }
  0x42   : > { %s1807_s1 = smov [#allocation2]  }
  0x43   : > { %p1711_p1 = pnand %p1709_p0, %p1697_p3  ;;  %s1713_s27 = sshll.u32 %s1807_s1, 4  ;;  %s1714_s27 = int_to_ptr.vmem [resolvable:$false] %s1713_s27 }
  0x44   : > { %s1715_s8 = scalar_lea.vmem %s1714_s27, 4096  ;;  %p1716_p6 = scmp.lt.s32.totalorder %s248_s2, %s1714_s27 }
  0x45   : > { %p1712_p2 = pneg %p1711_p1  ;;  %p1717_p10 = scmp.lt.s32.totalorder %s1715_s8, %s1708_s14 }
  0x47   : > { %p1718_p5 = por %p1717_p10, %p1716_p6 }
  0x49   : > { %p1719_p12 = pnand %p1718_p5, %p1712_p2 }
  0x4b   : > { %1722 = shalt.err (!%p1719_p12)
}
  0x4c   : > { %s1808_s5 = smov 128   ;;  %s1809_s18 = smov 8  }
  0x4d   : > { %1534 = dma.hbm_to_vmem [thread:$0]  (!%p1993_p13), %s246_s4, 2048, %s248_s2, %s235_s11, %s1808_s5, %s1808_s5, %s1809_s18  }
  0x4e   : > { %259 = sbr.rel (%p1924_p8) target bundleno = 456 (0x1c8), region = 32  ;;  %s2004_s29 = sand.u32 (!%p1924_p8), 1, %s1777_s19  }
  0x4f   : > { %s1390_s12 = sshll.u32 (!%p1924_p8), %s2004_s29, 7  ;;  %s262_s13 = scalar_lea.sflag (!%p1924_p8), [#allocation3], %s2004_s29 }
  0x50   : > { %s2008_s15 = scalar_lea.vmem (!%p1924_p8), [#allocation2], %s1390_s12 }
  0x53   : > { %1756 = dma.done.wait (%p1914_p4), %s262_s13, 2048  }
  0x54   : > { %1758 = vsyncadd (%p1914_p4), %s262_s13, 4294965248  ;;  %p2517_p11 = scmp.eq.s32.totalorder %s1903_s26, 0 }
  0x56   : > { %1760 = dma.done.wait (%p2517_p11), [#allocation6], 12384   ;;  %p2518_p8 = pmov %p2517_p11 }
  0x57   : > { %v1810_v0 = vmov 0.0   ;;  %v421_v1 = vld [vmem:[#allocation5 + $0x2d8] sm:$0xff]  ;;  %v420_v2 = vld [vmem:[#allocation5 + $0x2d0] sm:$0xff]  ;;  %v415_v3 = vld [vmem:[#allocation5 + $0x2a8] sm:$0xff]  ;;  %s1077_s2 = sand.u32 1, %s1903_s26   ;;  %s2168_s3 = sshll.u32 %s2004_s29, 8 }
  0x58   : > { %1762 = vsyncadd (%p2518_p8), [#allocation6], 4294954912  ;;  %522 = vmatprep.mubr.f32.mxu0 %v1810_v0  ;;  %570 = vmatprep.mubr.f32.mxu1 %v1810_v0  ;;  %v414_v4 = vld [vmem:[#allocation5 + $0x2a0] sm:$0xff]  ;;  %v409_v5 = vld [vmem:[#allocation5 + $0x278] sm:$0xff]  ;;  %s2178_s4 = scalar_lea.vmem [#allocation8], %s2168_s3  ;;  %s2259_s28 = scalar_lea.vmem [#allocation9], %s2168_s3 }
  0x59   : > { %458 = vmatprep.subr.mxu0 %v421_v1  ;;  %1458 = vmatprep.subr.mxu1 %v421_v1  ;;  %v408_v6 = vld [vmem:[#allocation5 + $0x270] sm:$0xff]  ;;  %v403_v7 = vld [vmem:[#allocation5 + $0x248] sm:$0xff]  ;;  %v402_v8 = vld [vmem:[#allocation5 + $0x240] sm:$0xff]  ;;  %s2263_s30 = scalar_lea.vmem [#allocation11], %s2168_s3  ;;  %s1073_s16 = scalar_lea.sflag [#allocation4], %s2004_s29 }
  0x5a   : > { %459 = vmatpush1.msra.mxu0 %v420_v2  ;;  %1474 = vmatpush1.msra.mxu1 %v420_v2  ;;  %v397_v9 = vld [vmem:[#allocation5 + $0x218] sm:$0xff]  ;;  %v396_v10 = vld [vmem:[#allocation5 + $0x210] sm:$0xff]  ;;  %v391_v11 = vld [vmem:[#allocation5 + $0x1e8] sm:$0xff]  ;;  %s2393_s17 = scalar_lea.sflag [#allocation10], %s1077_s2 }
  0x5b   : > { %460 = vmatprep.subr.mxu0 %v415_v3  ;;  %1459 = vmatprep.subr.mxu1 %v415_v3  ;;  %v390_v12 = vld [vmem:[#allocation5 + $0x1e0] sm:$0xff]  ;;  %v385_v13 = vld [vmem:[#allocation5 + $0x1b8] sm:$0xff]  ;;  %v384_v14 = vld [vmem:[#allocation5 + $0x1b0] sm:$0xff] }
  0x5c   : > { %461 = vmatpush1.msra.mxu0 %v414_v4  ;;  %1475 = vmatpush1.msra.mxu1 %v414_v4  ;;  %v379_v15 = vld [vmem:[#allocation5 + $0x188] sm:$0xff]  ;;  %v378_v16 = vld [vmem:[#allocation5 + $0x180] sm:$0xff]  ;;  %v373_v17 = vld [vmem:[#allocation5 + $0x158] sm:$0xff] }
  0x5d   : > { %462 = vmatprep.subr.mxu0 %v409_v5  ;;  %1460 = vmatprep.subr.mxu1 %v409_v5  ;;  %v372_v18 = vld [vmem:[#allocation5 + $0x150] sm:$0xff]  ;;  %v367_v19 = vld [vmem:[#allocation5 + $0x128] sm:$0xff]  ;;  %v366_v20 = vld [vmem:[#allocation5 + $0x120] sm:$0xff] }
  0x5e   : > { %463 = vmatpush1.msra.mxu0 %v408_v6  ;;  %1476 = vmatpush1.msra.mxu1 %v408_v6  ;;  %v361_v21 = vld [vmem:[#allocation5 + $0xf8] sm:$0xff]  ;;  %v360_v22 = vld [vmem:[#allocation5 + $0xf0] sm:$0xff]  ;;  %v355_v23 = vld [vmem:[#allocation5 + $0xc8] sm:$0xff] }
  0x5f   : > { %464 = vmatprep.subr.mxu0 %v403_v7  ;;  %1461 = vmatprep.subr.mxu1 %v403_v7  ;;  %v354_v24 = vld [vmem:[#allocation5 + $0xc0] sm:$0xff]  ;;  %v349_v25 = vld [vmem:[#allocation5 + $0x98] sm:$0xff]  ;;  %v348_v26 = vld [vmem:[#allocation5 + $0x90] sm:$0xff] }
  0x60   : > { %465 = vmatpush1.msra.mxu0 %v402_v8  ;;  %1477 = vmatpush1.msra.mxu1 %v402_v8  ;;  %v343_v27 = vld [vmem:[#allocation5 + $0x68] sm:$0xff]  ;;  %v342_v28 = vld [vmem:[#allocation5 + $0x60] sm:$0xff]  ;;  %v337_v29 = vld [vmem:[#allocation5 + $0x38] sm:$0xff] }
  0x61   : > { %466 = vmatprep.subr.mxu0 %v397_v9  ;;  %1462 = vmatprep.subr.mxu1 %v397_v9  ;;  %v336_v30 = vld [vmem:[#allocation5 + $0x30] sm:$0xff]  ;;  %v331_v31 = vld [vmem:[#allocation5 + $0x8] sm:$0xff]  ;;  %v330_v32 = vld [vmem:[#allocation5] sm:$0xff] }
  0x62   : > { %467 = vmatpush1.msra.mxu0 %v396_v10  ;;  %1478 = vmatpush1.msra.mxu1 %v396_v10  ;;  %v2021_v33 = vld [vmem:[%s2008_s15] sm:$0xff]  ;;  %v423_v35 = vld [vmem:[#allocation5 + $0x2e8] sm:$0xff]  ;;  %v425_v36 = vld [vmem:[#allocation5 + $0x2f8] sm:$0xff] }
  0x63   : > { %468 = vmatprep.subr.mxu0 %v391_v11  ;;  %1463 = vmatprep.subr.mxu1 %v391_v11  ;;  %v2024_v34 = vld [vmem:[%s2008_s15 + $0x40] sm:$0xff]  ;;  %v424_v38 = vld [vmem:[#allocation5 + $0x2f0] sm:$0xff]  ;;  %v417_v39 = vld [vmem:[#allocation5 + $0x2b8] sm:$0xff] }
  0x64   : > { %469 = vmatpush1.msra.mxu0 %v390_v12  ;;  %1479 = vmatpush1.msra.mxu1 %v390_v12  ;;  %v422_v37 = vld [vmem:[#allocation5 + $0x2e0] sm:$0xff]  ;;  %v419_v40 = vld [vmem:[#allocation5 + $0x2c8] sm:$0xff]  ;;  %v416_v41 = vld [vmem:[#allocation5 + $0x2b0] sm:$0xff] }
  0x65   : > { %470 = vmatprep.subr.mxu0 %v385_v13  ;;  %1464 = vmatprep.subr.mxu1 %v385_v13  ;;  %v418_v42 = vld [vmem:[#allocation5 + $0x2c0] sm:$0xff]  ;;  %v2029_v43 = vld [vmem:[%s2008_s15 + $0x8] sm:$0xff]  ;;  %v413_v46 = vld [vmem:[#allocation5 + $0x298] sm:$0xff] }
  0x66   : > { %471 = vmatpush1.msra.mxu0 %v384_v14  ;;  %1480 = vmatpush1.msra.mxu1 %v384_v14  ;;  %v2032_v44 = vld [vmem:[%s2008_s15 + $0x48] sm:$0xff]  ;;  %v410_v47 = vld [vmem:[#allocation5 + $0x280] sm:$0xff]  ;;  %v412_v48 = vld [vmem:[#allocation5 + $0x290] sm:$0xff] }
  0x67   : > { %472 = vmatprep.subr.mxu0 %v379_v15  ;;  %1465 = vmatprep.subr.mxu1 %v379_v15  ;;  %v411_v45 = vld [vmem:[#allocation5 + $0x288] sm:$0xff]  ;;  %v405_v49 = vld [vmem:[#allocation5 + $0x258] sm:$0xff]  ;;  %v404_v51 = vld [vmem:[#allocation5 + $0x250] sm:$0xff] }
  0x68   : > { %473 = vmatpush1.msra.mxu0 %v378_v16  ;;  %1481 = vmatpush1.msra.mxu1 %v378_v16  ;;  %v407_v50 = vld [vmem:[#allocation5 + $0x268] sm:$0xff]  ;;  %v406_v52 = vld [vmem:[#allocation5 + $0x260] sm:$0xff]  ;;  %v2039_v53 = vld [vmem:[%s2008_s15 + $0x10] sm:$0xff] }
  0x69   : > { %474 = vmatprep.subr.mxu0 %v373_v17  ;;  %1466 = vmatprep.subr.mxu1 %v373_v17  ;;  %v2042_v54 = vld [vmem:[%s2008_s15 + $0x50] sm:$0xff]  ;;  %v399_v55 = vld [vmem:[#allocation5 + $0x228] sm:$0xff]  ;;  %v401_v56 = vld [vmem:[#allocation5 + $0x238] sm:$0xff] }
  0x6a   : > { %475 = vmatpush1.msra.mxu0 %v372_v18  ;;  %1482 = vmatpush1.msra.mxu1 %v372_v18  ;;  %v398_v57 = vld [vmem:[#allocation5 + $0x220] sm:$0xff]  ;;  %v400_v58 = vld [vmem:[#allocation5 + $0x230] sm:$0xff]  ;;  %v393_v59 = vld [vmem:[#allocation5 + $0x1f8] sm:$0xff] }
  0x6b   : > { %476 = vmatprep.subr.mxu0 %v367_v19  ;;  %1467 = vmatprep.subr.mxu1 %v367_v19  ;;  %v395_v60 = vld [vmem:[#allocation5 + $0x208] sm:$0xff]  ;;  %v392_v61 = vld [vmem:[#allocation5 + $0x1f0] sm:$0xff]  ;;  %v394_v62 = vld [vmem:[#allocation5 + $0x200] sm:$0xff] }
  0x6c   : > { %477 = vmatpush1.msra.mxu0 %v366_v20  ;;  %1483 = vmatpush1.msra.mxu1 %v366_v20  ;;  %v2049_v63 = vld [vmem:[%s2008_s15 + $0x18] sm:$0xff]  ;;  %v387_v2 = vld [vmem:[#allocation5 + $0x1c8] sm:$0xff]  ;;  %v386_v4 = vld [vmem:[#allocation5 + $0x1c0] sm:$0xff] }
  0x6d   : > { %478 = vmatprep.subr.mxu0 %v361_v21  ;;  %1468 = vmatprep.subr.mxu1 %v361_v21  ;;  %v2052_v1 = vld [vmem:[%s2008_s15 + $0x58] sm:$0xff]  ;;  %v388_v5 = vld [vmem:[#allocation5 + $0x1d0] sm:$0xff]  ;;  %v383_v7 = vld [vmem:[#allocation5 + $0x1a8] sm:$0xff] }
  0x6e   : > { %479 = vmatpush1.msra.mxu0 %v360_v22  ;;  %1484 = vmatpush1.msra.mxu1 %v360_v22  ;;  %v389_v3 = vld [vmem:[#allocation5 + $0x1d8] sm:$0xff]  ;;  %v380_v8 = vld [vmem:[#allocation5 + $0x190] sm:$0xff]  ;;  %v382_v9 = vld [vmem:[#allocation5 + $0x1a0] sm:$0xff] }
  0x6f   : > { %480 = vmatprep.subr.mxu0 %v355_v23  ;;  %1469 = vmatprep.subr.mxu1 %v355_v23  ;;  %v381_v6 = vld [vmem:[#allocation5 + $0x198] sm:$0xff]  ;;  %v2059_v10 = vld [vmem:[%s2008_s15 + $0x20] sm:$0xff]  ;;  %v375_v12 = vld [vmem:[#allocation5 + $0x168] sm:$0xff] }
  0x70   : > { %481 = vmatpush1.msra.mxu0 %v354_v24  ;;  %1485 = vmatpush1.msra.mxu1 %v354_v24  ;;  %v2062_v11 = vld [vmem:[%s2008_s15 + $0x60] sm:$0xff]  ;;  %v377_v13 = vld [vmem:[#allocation5 + $0x178] sm:$0xff]  ;;  %v376_v15 = vld [vmem:[#allocation5 + $0x170] sm:$0xff] }
  0x71   : > { %482 = vmatprep.subr.mxu0 %v349_v25  ;;  %1470 = vmatprep.subr.mxu1 %v349_v25  ;;  %v374_v14 = vld [vmem:[#allocation5 + $0x160] sm:$0xff]  ;;  %v369_v16 = vld [vmem:[#allocation5 + $0x138] sm:$0xff]  ;;  %v371_v17 = vld [vmem:[#allocation5 + $0x148] sm:$0xff] }
  0x72   : > { %483 = vmatpush1.msra.mxu0 %v348_v26  ;;  %1486 = vmatpush1.msra.mxu1 %v348_v26  ;;  %v368_v18 = vld [vmem:[#allocation5 + $0x130] sm:$0xff]  ;;  %v370_v19 = vld [vmem:[#allocation5 + $0x140] sm:$0xff]  ;;  %v2069_v20 = vld [vmem:[%s2008_s15 + $0x28] sm:$0xff] }
  0x73   : > { %484 = vmatprep.subr.mxu0 %v343_v27  ;;  %1471 = vmatprep.subr.mxu1 %v343_v27  ;;  %v2072_v21 = vld [vmem:[%s2008_s15 + $0x68] sm:$0xff]  ;;  %v365_v23 = vld [vmem:[#allocation5 + $0x118] sm:$0xff]  ;;  %v362_v24 = vld [vmem:[#allocation5 + $0x100] sm:$0xff] }
  0x74   : > { %485 = vmatpush1.msra.mxu0 %v342_v28  ;;  %1487 = vmatpush1.msra.mxu1 %v342_v28  ;;  %v363_v22 = vld [vmem:[#allocation5 + $0x108] sm:$0xff]  ;;  %v364_v25 = vld [vmem:[#allocation5 + $0x110] sm:$0xff]  ;;  %v357_v26 = vld [vmem:[#allocation5 + $0xd8] sm:$0xff] }
  0x75   : > { %486 = vmatprep.subr.mxu0 %v337_v29  ;;  %1472 = vmatprep.subr.mxu1 %v337_v29  ;;  %v359_v27 = vld [vmem:[#allocation5 + $0xe8] sm:$0xff]  ;;  %v356_v28 = vld [vmem:[#allocation5 + $0xd0] sm:$0xff]  ;;  %v358_v29 = vld [vmem:[#allocation5 + $0xe0] sm:$0xff] }
  0x76   : > { %487 = vmatpush1.msra.mxu0 %v336_v30  ;;  %1488 = vmatpush1.msra.mxu1 %v336_v30  ;;  %v2079_v30 = vld [vmem:[%s2008_s15 + $0x30] sm:$0xff] }
  0x77   : > { %488 = vmatprep.subr.mxu0 %v331_v31  ;;  %1473 = vmatprep.subr.mxu1 %v331_v31  ;;  %v2082_v31 = vld [vmem:[%s2008_s15 + $0x70] sm:$0xff] }
  0x78   : > { %489 = vmatpush1.msra.mxu0 %v330_v32  ;;  %1489 = vmatpush1.msra.mxu1 %v330_v32  ;;  %v351_v32 = vld [vmem:[#allocation5 + $0xa8] sm:$0xff] }
  0x79   : > { %523 = vmatmul.mubr.f32.vlgmr.msra.gmra.mxu0 %v2021_v33  ;;  %571 = vmatmul.mubr.f32.vlgmr.msra.gmra.mxu1 %v2024_v34 }
  0x7a   : > { %619 = vmatprep.subr.mxu1 %v423_v35  ;;  %780 = vmatprep.subr.mxu0 %v425_v36  ;;  %v353_v35 = vld [vmem:[#allocation5 + $0xb8] sm:$0xff]  ;;  %v350_v36 = vld [vmem:[#allocation5 + $0xa0] sm:$0xff] }
  0x7b   : > { %620 = vmatpush1.msra.mxu1 %v422_v37  ;;  %781 = vmatpush1.msra.mxu0 %v424_v38  ;;  %v352_v37 = vld [vmem:[#allocation5 + $0xb0] sm:$0xff]  ;;  %v345_v38 = vld [vmem:[#allocation5 + $0x78] sm:$0xff] }
  0x7c   : > { %621 = vmatprep.subr.mxu1 %v417_v39  ;;  %782 = vmatprep.subr.mxu0 %v419_v40  ;;  %v347_v39 = vld [vmem:[#allocation5 + $0x88] sm:$0xff]  ;;  %v344_v40 = vld [vmem:[#allocation5 + $0x70] sm:$0xff] }
  0x7d   : > { %528 = vmatprep.mubr.f32.mxu0 %v1810_v0  ;;  %576 = vmatprep.mubr.f32.mxu1 %v1810_v0 }
  0x7e   : > { %622 = vmatpush1.msra.mxu1 %v416_v41  ;;  %783 = vmatpush1.msra.mxu0 %v418_v42  ;;  %v346_v41 = vld [vmem:[#allocation5 + $0x80] sm:$0xff]  ;;  %v321_v42 = vld [vmem:[%s2008_s15 + $0x38] sm:$0xff] }
  0x7f   : > { %529 = vmatmul.mubr.f32.gmra.mxu0 %v2029_v43  ;;  %577 = vmatmul.mubr.f32.gmra.mxu1 %v2032_v44 }
  0x80   : > { %623 = vmatprep.subr.mxu1 %v411_v45  ;;  %784 = vmatprep.subr.mxu0 %v413_v46  ;;  %v2090_v45 = vld [vmem:[%s2008_s15 + $0x78] sm:$0xff]  ;;  %v339_v46 = vld [vmem:[#allocation5 + $0x48] sm:$0xff] }
  0x81   : > { %624 = vmatpush1.msra.mxu1 %v410_v47  ;;  %785 = vmatpush1.msra.mxu0 %v412_v48  ;;  %v341_v47 = vld [vmem:[#allocation5 + $0x58] sm:$0xff]  ;;  %v338_v48 = vld [vmem:[#allocation5 + $0x40] sm:$0xff] }
  0x82   : > { %625 = vmatprep.subr.mxu1 %v405_v49  ;;  %786 = vmatprep.subr.mxu0 %v407_v50  ;;  %v340_v49 = vld [vmem:[#allocation5 + $0x50] sm:$0xff]  ;;  %v333_v50 = vld [vmem:[#allocation5 + $0x18] sm:$0xff] }
  0x83   : > { %534 = vmatprep.mubr.f32.mxu0 %v1810_v0  ;;  %582 = vmatprep.mubr.f32.mxu1 %v1810_v0 }
  0x84   : > { %626 = vmatpush1.msra.mxu1 %v404_v51  ;;  %787 = vmatpush1.msra.mxu0 %v406_v52  ;;  %v335_v51 = vld [vmem:[#allocation5 + $0x28] sm:$0xff]  ;;  %v332_v52 = vld [vmem:[#allocation5 + $0x10] sm:$0xff] }
  0x85   : > { %535 = vmatmul.mubr.f32.gmra.mxu0 %v2039_v53  ;;  %583 = vmatmul.mubr.f32.gmra.mxu1 %v2042_v54 }
  0x86   : > { %627 = vmatprep.subr.mxu1 %v399_v55  ;;  %788 = vmatprep.subr.mxu0 %v401_v56  ;;  %v334_v55 = vld [vmem:[#allocation5 + $0x20] sm:$0xff] }
  0x87   : > { %628 = vmatpush1.msra.mxu1 %v398_v57  ;;  %789 = vmatpush1.msra.mxu0 %v400_v58 }
  0x88   : > { %629 = vmatprep.subr.mxu1 %v393_v59  ;;  %790 = vmatprep.subr.mxu0 %v395_v60 }
  0x89   : > { %540 = vmatprep.mubr.f32.mxu0 %v1810_v0  ;;  %588 = vmatprep.mubr.f32.mxu1 %v1810_v0 }
  0x8a   : > { %630 = vmatpush1.msra.mxu1 %v392_v61  ;;  %791 = vmatpush1.msra.mxu0 %v394_v62 }
  0x8b   : > { %541 = vmatmul.mubr.f32.gmra.mxu0 %v2049_v63  ;;  %589 = vmatmul.mubr.f32.gmra.mxu1 %v2052_v1 }
  0x8c   : > { %631 = vmatprep.subr.mxu1 %v387_v2  ;;  %792 = vmatprep.subr.mxu0 %v389_v3 }
  0x8d   : > { %632 = vmatpush1.msra.mxu1 %v386_v4  ;;  %793 = vmatpush1.msra.mxu0 %v388_v5 }
  0x8e   : > { %633 = vmatprep.subr.mxu1 %v381_v6  ;;  %794 = vmatprep.subr.mxu0 %v383_v7 }
  0x8f   : > { %546 = vmatprep.mubr.f32.mxu0 %v1810_v0  ;;  %594 = vmatprep.mubr.f32.mxu1 %v1810_v0 }
  0x90   : > { %634 = vmatpush1.msra.mxu1 %v380_v8  ;;  %795 = vmatpush1.msra.mxu0 %v382_v9 }
  0x91   : > { %547 = vmatmul.mubr.f32.gmra.mxu0 %v2059_v10  ;;  %595 = vmatmul.mubr.f32.gmra.mxu1 %v2062_v11 }
  0x92   : > { %635 = vmatprep.subr.mxu1 %v375_v12  ;;  %796 = vmatprep.subr.mxu0 %v377_v13 }
  0x93   : > { %636 = vmatpush1.msra.mxu1 %v374_v14  ;;  %797 = vmatpush1.msra.mxu0 %v376_v15 }
  0x94   : > { %637 = vmatprep.subr.mxu1 %v369_v16  ;;  %798 = vmatprep.subr.mxu0 %v371_v17 }
  0x95   : > { %552 = vmatprep.mubr.f32.mxu0 %v1810_v0  ;;  %600 = vmatprep.mubr.f32.mxu1 %v1810_v0 }
  0x96   : > { %638 = vmatpush1.msra.mxu1 %v368_v18  ;;  %799 = vmatpush1.msra.mxu0 %v370_v19 }
  0x97   : > { %553 = vmatmul.mubr.f32.gmra.mxu0 %v2069_v20  ;;  %601 = vmatmul.mubr.f32.gmra.mxu1 %v2072_v21 }
  0x98   : > { %639 = vmatprep.subr.mxu1 %v363_v22  ;;  %800 = vmatprep.subr.mxu0 %v365_v23 }
  0x99   : > { %640 = vmatpush1.msra.mxu1 %v362_v24  ;;  %801 = vmatpush1.msra.mxu0 %v364_v25 }
  0x9a   : > { %641 = vmatprep.subr.mxu1 %v357_v26  ;;  %802 = vmatprep.subr.mxu0 %v359_v27 }
  0x9b   : > { %558 = vmatprep.mubr.f32.mxu0 %v1810_v0  ;;  %606 = vmatprep.mubr.f32.mxu1 %v1810_v0 }
  0x9c   : > { %642 = vmatpush1.msra.mxu1 %v356_v28  ;;  %803 = vmatpush1.msra.mxu0 %v358_v29 }
  0x9d   : > { %559 = vmatmul.mubr.f32.gmra.mxu0 %v2079_v30  ;;  %607 = vmatmul.mubr.f32.gmra.mxu1 %v2082_v31 }
  0x9e   : > { %643 = vmatprep.subr.mxu1 %v351_v32  ;;  %804 = vmatprep.subr.mxu0 %v353_v35 }
  0x9f   : > { %644 = vmatpush1.msra.mxu1 %v350_v36  ;;  %805 = vmatpush1.msra.mxu0 %v352_v37 }
  0xa0   : > { %645 = vmatprep.subr.mxu1 %v345_v38  ;;  %806 = vmatprep.subr.mxu0 %v347_v39 }
  0xa1   : > { %564 = vmatprep.mubr.f32.mxu0 %v1810_v0  ;;  %612 = vmatprep.mubr.f32.mxu1 %v1810_v0 }
  0xa2   : > { %646 = vmatpush1.msra.mxu1 %v344_v40  ;;  %807 = vmatpush1.msra.mxu0 %v346_v41 }
  0xa3   : > { %565 = vmatmul.mubr.f32.gmra.mxu0 %v321_v42  ;;  %613 = vmatmul.mubr.f32.gmra.mxu1 %v2090_v45 }
  0xa4   : > { %647 = vmatprep.subr.mxu1 %v339_v46  ;;  %808 = vmatprep.subr.mxu0 %v341_v47 }
  0xa5   : > { %648 = vmatpush1.msra.mxu1 %v338_v48  ;;  %809 = vmatpush1.msra.mxu0 %v340_v49 }
  0xa6   : > { %649 = vmatprep.subr.mxu1 %v333_v50  ;;  %810 = vmatprep.subr.mxu0 %v335_v51 }
  0xa7   : > { %650 = vmatpush1.msra.mxu1 %v332_v52  ;;  %683 = vmatprep.mubr.f32.mxu1 %v1810_v0 }
  0xa8   : > { %811 = vmatpush1.msra.mxu0 %v334_v55  ;;  %844 = vmatprep.mubr.f32.mxu0 %v1810_v0 }
  0xa9   : > { %684 = vmatmul.mubr.f32.vlgmr.msra.gmra.mxu1 %v2021_v33  ;;  %845 = vmatmul.mubr.f32.vlgmr.msra.gmra.mxu0 %v2021_v33  ;;  %v428_v33 = vlaneseq }
  0xaa   : > { %689 = vmatprep.mubr.f32.mxu1 %v1810_v0  ;;  %850 = vmatprep.mubr.f32.mxu0 %v1810_v0 }
  0xad   : > { %690 = vmatmul.mubr.f32.gmra.mxu1 %v2029_v43  ;;  %851 = vmatmul.mubr.f32.gmra.mxu0 %v2029_v43 }
  0xae   : > { %695 = vmatprep.mubr.f32.mxu1 %v1810_v0  ;;  %856 = vmatprep.mubr.f32.mxu0 %v1810_v0 }
  0xb1   : > { %696 = vmatmul.mubr.f32.gmra.mxu1 %v2039_v53  ;;  %857 = vmatmul.mubr.f32.gmra.mxu0 %v2039_v53 }
  0xb2   : > { %701 = vmatprep.mubr.f32.mxu1 %v1810_v0  ;;  %862 = vmatprep.mubr.f32.mxu0 %v1810_v0 }
  0xb5   : > { %702 = vmatmul.mubr.f32.gmra.mxu1 %v2049_v63  ;;  %863 = vmatmul.mubr.f32.gmra.mxu0 %v2049_v63 }
  0xb6   : > { %707 = vmatprep.mubr.f32.mxu1 %v1810_v0  ;;  %868 = vmatprep.mubr.f32.mxu0 %v1810_v0 }
  0xb9   : > { %708 = vmatmul.mubr.f32.gmra.mxu1 %v2059_v10  ;;  %869 = vmatmul.mubr.f32.gmra.mxu0 %v2059_v10 }
  0xba   : > { %713 = vmatprep.mubr.f32.mxu1 %v1810_v0  ;;  %874 = vmatprep.mubr.f32.mxu0 %v1810_v0 }
  0xbd   : > { %714 = vmatmul.mubr.f32.gmra.mxu1 %v2069_v20  ;;  %875 = vmatmul.mubr.f32.gmra.mxu0 %v2069_v20 }
  0xbe   : > { %719 = vmatprep.mubr.f32.mxu1 %v1810_v0  ;;  %880 = vmatprep.mubr.f32.mxu0 %v1810_v0 }
  0xc1   : > { %720 = vmatmul.mubr.f32.gmra.mxu1 %v2079_v30  ;;  %881 = vmatmul.mubr.f32.gmra.mxu0 %v2079_v30 }
  0xc2   : > { %725 = vmatprep.mubr.f32.mxu1 %v1810_v0  ;;  %886 = vmatprep.mubr.f32.mxu0 %v1810_v0 }
  0xc5   : > { %726 = vmatmul.mubr.f32.gmra.mxu1 %v321_v42  ;;  %887 = vmatmul.mubr.f32.gmra.mxu0 %v321_v42 }
  0xc6   : > { %731 = vmatprep.mubr.f32.mxu1 %v1810_v0  ;;  %892 = vmatprep.mubr.f32.mxu0 %v1810_v0 }
  0xc9   : > { %732 = vmatmul.mubr.f32.gmra.mxu1 %v2024_v34  ;;  %893 = vmatmul.mubr.f32.gmra.mxu0 %v2024_v34  ;;  %v2158_v34 = vshrl.u32 %v428_v33, 7 }
  0xca   : > { %737 = vmatprep.mubr.f32.mxu1 %v1810_v0  ;;  %898 = vmatprep.mubr.f32.mxu0 %v1810_v0 }
  0xcb   : > { %v430_v43 = vsub.s32 0, %v2158_v34  ;;  %v434_v53 = vsub.s32 1, %v2158_v34 }
  0xcd   : > { %738 = vmatmul.mubr.f32.gmra.mxu1 %v2032_v44  ;;  %899 = vmatmul.mubr.f32.gmra.mxu0 %v2032_v44  ;;  %v2161_v44 = vld [vmem:[#allocation7] sm:$0x3f] }
  0xce   : > { %743 = vmatprep.mubr.f32.mxu1 %v1810_v0  ;;  %904 = vmatprep.mubr.f32.mxu0 %v1810_v0 }
  0xd1   : > { %744 = vmatmul.mubr.f32.gmra.mxu1 %v2042_v54  ;;  %905 = vmatmul.mubr.f32.gmra.mxu0 %v2042_v54  ;;  %v2165_v54 = vrot.slane %v2161_v44, %v430_v43 }
  0xd2   : > { %749 = vmatprep.mubr.f32.mxu1 %v1810_v0  ;;  %910 = vmatprep.mubr.f32.mxu0 %v1810_v0 }
  0xd5   : > { %750 = vmatmul.mubr.f32.gmra.mxu1 %v2052_v1  ;;  %911 = vmatmul.mubr.f32.gmra.mxu0 %v2052_v1 }
  0xd6   : > { %755 = vmatprep.mubr.f32.mxu1 %v1810_v0  ;;  %916 = vmatprep.mubr.f32.mxu0 %v1810_v0 }
  0xd9   : > { %756 = vmatmul.mubr.f32.gmra.mxu1 %v2062_v11  ;;  %917 = vmatmul.mubr.f32.gmra.mxu0 %v2062_v11 }
  0xda   : > { %761 = vmatprep.mubr.f32.mxu1 %v1810_v0  ;;  %922 = vmatprep.mubr.f32.mxu0 %v1810_v0 }
  0xdd   : > { %762 = vmatmul.mubr.f32.gmra.mxu1 %v2072_v21  ;;  %923 = vmatmul.mubr.f32.gmra.mxu0 %v2072_v21 }
  0xde   : > { %767 = vmatprep.mubr.f32.mxu1 %v1810_v0  ;;  %928 = vmatprep.mubr.f32.mxu0 %v1810_v0 }
  0xe1   : > { %768 = vmatmul.mubr.f32.gmra.mxu1 %v2082_v31  ;;  %929 = vmatmul.mubr.f32.gmra.mxu0 %v2082_v31 }
  0xe2   : > { %773 = vmatprep.mubr.f32.mxu1 %v1810_v0  ;;  %934 = vmatprep.mubr.f32.mxu0 %v1810_v0  ;;  %v2171_v0 = vrot.slane %v2161_v44, %v434_v53 }
  0xe5   : > { %774 = vmatmul.mubr.f32.gmra.mxu1 %v2090_v45  ;;  %935 = vmatmul.mubr.f32.gmra.mxu0 %v2090_v45 }
 0x139   : > { %v524_v56 = vpop.f32.mrf.mxu0  ;;  %v572_v57 = vpop.f32.mrf.mxu1 }
 0x13a   : > { %v525_v58 = vadd.f32 %v524_v56, %v2165_v54  ;;  %v573_v59 = vadd.f32 %v572_v57, %v2165_v54 }
 0x13b   : > { %v526_v60 = vpop.f32.mrf.mxu0  ;;  %v574_v61 = vpop.f32.mrf.mxu1 }
 0x13c   : > { %v941_v62 = vmul.f32 0.088388346, %v525_v58  ;;  %v949_v63 = vmul.f32 0.088388346, %v573_v59  ;;  %v527_v1 = vadd.f32 %v526_v60, %v2171_v0  ;;  %v575_v2 = vadd.f32 %v574_v61, %v2171_v0 }
 0x13e   : > { %957 = vst [vmem:[%s2178_s4] sm:$0xff] %v941_v62  ;;  %965 = vst [vmem:[%s2178_s4 + $0x40] sm:$0xff] %v949_v63  ;;  %v1005_v3 = vmul.f32 0.088388346, %v527_v1  ;;  %v1013_v4 = vmul.f32 0.088388346, %v575_v2 }
 0x13f   : > { %v530_v5 = vpop.f32.mrf.mxu0  ;;  %v578_v6 = vpop.f32.mrf.mxu1 }
 0x140   : > { %1396 = vst [vmem:[%s2178_s4 + $0x80] sm:$0xff] %v1005_v3  ;;  %1404 = vst [vmem:[%s2178_s4 + $0xc0] sm:$0xff] %v1013_v4  ;;  %v531_v7 = vadd.f32 %v530_v5, %v2165_v54  ;;  %v579_v8 = vadd.f32 %v578_v6, %v2165_v54 }
 0x141   : > { %v532_v9 = vpop.f32.mrf.mxu0  ;;  %v580_v10 = vpop.f32.mrf.mxu1 }
 0x142   : > { %v942_v11 = vmul.f32 0.088388346, %v531_v7  ;;  %v950_v12 = vmul.f32 0.088388346, %v579_v8  ;;  %v533_v13 = vadd.f32 %v532_v9, %v2171_v0  ;;  %v581_v14 = vadd.f32 %v580_v10, %v2171_v0 }
 0x144   : > { %958 = vst [vmem:[%s2178_s4 + $0x8] sm:$0xff] %v942_v11  ;;  %966 = vst [vmem:[%s2178_s4 + $0x48] sm:$0xff] %v950_v12  ;;  %v1006_v15 = vmul.f32 0.088388346, %v533_v13  ;;  %v1014_v16 = vmul.f32 0.088388346, %v581_v14 }
 0x145   : > { %v536_v17 = vpop.f32.mrf.mxu0  ;;  %v584_v18 = vpop.f32.mrf.mxu1 }
 0x146   : > { %1397 = vst [vmem:[%s2178_s4 + $0x88] sm:$0xff] %v1006_v15  ;;  %1405 = vst [vmem:[%s2178_s4 + $0xc8] sm:$0xff] %v1014_v16  ;;  %v537_v19 = vadd.f32 %v536_v17, %v2165_v54  ;;  %v585_v20 = vadd.f32 %v584_v18, %v2165_v54  ;;  %v438_v15 = vsub.s32 2, %v2158_v34  ;;  %v446_v16 = vsub.s32 4, %v2158_v34 }
 0x147   : > { %v538_v21 = vpop.f32.mrf.mxu0  ;;  %v586_v22 = vpop.f32.mrf.mxu1 }
 0x148   : > { %v943_v23 = vmul.f32 0.088388346, %v537_v19  ;;  %v951_v24 = vmul.f32 0.088388346, %v585_v20  ;;  %v539_v25 = vadd.f32 %v538_v21, %v2171_v0  ;;  %v587_v26 = vadd.f32 %v586_v22, %v2171_v0 }
 0x14a   : > { %959 = vst [vmem:[%s2178_s4 + $0x10] sm:$0xff] %v943_v23  ;;  %967 = vst [vmem:[%s2178_s4 + $0x50] sm:$0xff] %v951_v24  ;;  %v1007_v27 = vmul.f32 0.088388346, %v539_v25  ;;  %v1015_v28 = vmul.f32 0.088388346, %v587_v26 }
 0x14b   : > { %v542_v29 = vpop.f32.mrf.mxu0  ;;  %v590_v30 = vpop.f32.mrf.mxu1  ;;  %v442_v23 = vsub.s32 3, %v2158_v34  ;;  %v450_v24 = vsub.s32 5, %v2158_v34 }
 0x14c   : > { %1398 = vst [vmem:[%s2178_s4 + $0x90] sm:$0xff] %v1007_v27  ;;  %1406 = vst [vmem:[%s2178_s4 + $0xd0] sm:$0xff] %v1015_v28  ;;  %v543_v31 = vadd.f32 %v542_v29, %v2165_v54  ;;  %v591_v32 = vadd.f32 %v590_v30, %v2165_v54  ;;  %v2239_v27 = vrot.slane %v2161_v44, %v438_v15 }
 0x14d   : > { %v544_v35 = vpop.f32.mrf.mxu0  ;;  %v592_v36 = vpop.f32.mrf.mxu1  ;;  %v2242_v28 = vrot.slane %v2161_v44, %v446_v16 }
 0x14e   : > { %v944_v37 = vmul.f32 0.088388346, %v543_v31  ;;  %v952_v38 = vmul.f32 0.088388346, %v591_v32  ;;  %v545_v39 = vadd.f32 %v544_v35, %v2171_v0  ;;  %v593_v40 = vadd.f32 %v592_v36, %v2171_v0 }
 0x14f   : > { %v2249_v35 = vrot.slane %v2161_v44, %v442_v23  ;;  %v2252_v36 = vrot.slane %v2161_v44, %v450_v24 }
 0x150   : > { %960 = vst [vmem:[%s2178_s4 + $0x18] sm:$0xff] %v944_v37  ;;  %968 = vst [vmem:[%s2178_s4 + $0x58] sm:$0xff] %v952_v38  ;;  %v1008_v41 = vmul.f32 0.088388346, %v545_v39  ;;  %v1016_v42 = vmul.f32 0.088388346, %v593_v40 }
 0x151   : > { %v548_v45 = vpop.f32.mrf.mxu0  ;;  %v596_v46 = vpop.f32.mrf.mxu1 }
 0x152   : > { %1399 = vst [vmem:[%s2178_s4 + $0x98] sm:$0xff] %v1008_v41  ;;  %1407 = vst [vmem:[%s2178_s4 + $0xd8] sm:$0xff] %v1016_v42  ;;  %v549_v47 = vadd.f32 %v548_v45, %v2165_v54  ;;  %v597_v48 = vadd.f32 %v596_v46, %v2165_v54 }
 0x153   : > { %v550_v49 = vpop.f32.mrf.mxu0  ;;  %v598_v50 = vpop.f32.mrf.mxu1 }
 0x154   : > { %v945_v51 = vmul.f32 0.088388346, %v549_v47  ;;  %v953_v52 = vmul.f32 0.088388346, %v597_v48  ;;  %v551_v55 = vadd.f32 %v550_v49, %v2171_v0  ;;  %v599_v33 = vadd.f32 %v598_v50, %v2171_v0 }
 0x156   : > { %961 = vst [vmem:[%s2178_s4 + $0x20] sm:$0xff] %v945_v51  ;;  %969 = vst [vmem:[%s2178_s4 + $0x60] sm:$0xff] %v953_v52  ;;  %v1009_v43 = vmul.f32 0.088388346, %v551_v55  ;;  %v1017_v53 = vmul.f32 0.088388346, %v599_v33 }
 0x157   : > { %v554_v56 = vpop.f32.mrf.mxu0  ;;  %v602_v57 = vpop.f32.mrf.mxu1 }
 0x158   : > { %1400 = vst [vmem:[%s2178_s4 + $0xa0] sm:$0xff] %v1009_v43  ;;  %1408 = vst [vmem:[%s2178_s4 + $0xe0] sm:$0xff] %v1017_v53  ;;  %v555_v58 = vadd.f32 %v554_v56, %v2165_v54  ;;  %v603_v59 = vadd.f32 %v602_v57, %v2165_v54 }
 0x159   : > { %v556_v60 = vpop.f32.mrf.mxu0  ;;  %v604_v61 = vpop.f32.mrf.mxu1 }
 0x15a   : > { %v946_v62 = vmul.f32 0.088388346, %v555_v58  ;;  %v954_v63 = vmul.f32 0.088388346, %v603_v59  ;;  %v557_v1 = vadd.f32 %v556_v60, %v2171_v0  ;;  %v605_v2 = vadd.f32 %v604_v61, %v2171_v0 }
 0x15c   : > { %962 = vst [vmem:[%s2178_s4 + $0x28] sm:$0xff] %v946_v62  ;;  %970 = vst [vmem:[%s2178_s4 + $0x68] sm:$0xff] %v954_v63  ;;  %v1010_v3 = vmul.f32 0.088388346, %v557_v1  ;;  %v1018_v4 = vmul.f32 0.088388346, %v605_v2 }
 0x15d   : > { %v560_v5 = vpop.f32.mrf.mxu0  ;;  %v608_v6 = vpop.f32.mrf.mxu1 }
 0x15e   : > { %1401 = vst [vmem:[%s2178_s4 + $0xa8] sm:$0xff] %v1010_v3  ;;  %1409 = vst [vmem:[%s2178_s4 + $0xe8] sm:$0xff] %v1018_v4  ;;  %v561_v7 = vadd.f32 %v560_v5, %v2165_v54  ;;  %v609_v8 = vadd.f32 %v608_v6, %v2165_v54 }
 0x15f   : > { %v562_v9 = vpop.f32.mrf.mxu0  ;;  %v610_v10 = vpop.f32.mrf.mxu1 }
 0x160   : > { %v947_v11 = vmul.f32 0.088388346, %v561_v7  ;;  %v955_v12 = vmul.f32 0.088388346, %v609_v8  ;;  %v563_v13 = vadd.f32 %v562_v9, %v2171_v0  ;;  %v611_v14 = vadd.f32 %v610_v10, %v2171_v0 }
 0x162   : > { %963 = vst [vmem:[%s2178_s4 + $0x30] sm:$0xff] %v947_v11  ;;  %971 = vst [vmem:[%s2178_s4 + $0x70] sm:$0xff] %v955_v12  ;;  %v1011_v17 = vmul.f32 0.088388346, %v563_v13  ;;  %v1019_v18 = vmul.f32 0.088388346, %v611_v14 }
 0x163   : > { %v566_v19 = vpop.f32.mrf.mxu0  ;;  %v614_v20 = vpop.f32.mrf.mxu1 }
 0x164   : > { %1402 = vst [vmem:[%s2178_s4 + $0xb0] sm:$0xff] %v1011_v17  ;;  %1410 = vst [vmem:[%s2178_s4 + $0xf0] sm:$0xff] %v1019_v18  ;;  %v567_v21 = vadd.f32 %v566_v19, %v2165_v54  ;;  %v615_v22 = vadd.f32 %v614_v20, %v2165_v54 }
 0x165   : > { %v568_v25 = vpop.f32.mrf.mxu0  ;;  %v616_v26 = vpop.f32.mrf.mxu1 }
 0x166   : > { %v948_v29 = vmul.f32 0.088388346, %v567_v21  ;;  %v956_v30 = vmul.f32 0.088388346, %v615_v22  ;;  %v569_v31 = vadd.f32 %v568_v25, %v2171_v0  ;;  %v617_v54 = vadd.f32 %v616_v26, %v2171_v0 }
 0x168   : > { %964 = vst [vmem:[%s2178_s4 + $0x38] sm:$0xff] %v948_v29  ;;  %972 = vst [vmem:[%s2178_s4 + $0x78] sm:$0xff] %v956_v30  ;;  %v1012_v34 = vmul.f32 0.088388346, %v569_v31  ;;  %v1020_v32 = vmul.f32 0.088388346, %v617_v54 }
 0x169   : > { %v685_v37 = vpop.f32.mrf.mxu1  ;;  %v846_v38 = vpop.f32.mrf.mxu0 }
 0x16a   : > { %1403 = vst [vmem:[%s2178_s4 + $0xb8] sm:$0xff] %v1012_v34  ;;  %1411 = vst [vmem:[%s2178_s4 + $0xf8] sm:$0xff] %v1020_v32  ;;  %v686_v39 = vadd.f32 %v685_v37, %v2239_v27  ;;  %v847_v40 = vadd.f32 %v846_v38, %v2242_v28 }
 0x16b   : > { %v687_v0 = vpop.f32.mrf.mxu1  ;;  %v848_v41 = vpop.f32.mrf.mxu0 }
 0x16c   : > { %973 = vst [vmem:[%s2259_s28] sm:$0xff] %v686_v39  ;;  %989 = vst [vmem:[%s2263_s30] sm:$0xff] %v847_v40  ;;  %v688_v44 = vadd.f32 %v687_v0, %v2249_v35  ;;  %v849_v42 = vadd.f32 %v848_v41, %v2252_v36 }
 0x16d   : > { %v691_v45 = vpop.f32.mrf.mxu1  ;;  %v852_v46 = vpop.f32.mrf.mxu0 }
 0x16e   : > { %1412 = vst [vmem:[%s2259_s28 + $0x80] sm:$0xff] %v688_v44  ;;  %1428 = vst [vmem:[%s2263_s30 + $0x80] sm:$0xff] %v849_v42  ;;  %v692_v47 = vadd.f32 %v691_v45, %v2239_v27  ;;  %v853_v48 = vadd.f32 %v852_v46, %v2242_v28 }
 0x16f   : > { %v693_v49 = vpop.f32.mrf.mxu1  ;;  %v854_v50 = vpop.f32.mrf.mxu0 }
 0x170   : > { %974 = vst [vmem:[%s2259_s28 + $0x8] sm:$0xff] %v692_v47  ;;  %990 = vst [vmem:[%s2263_s30 + $0x8] sm:$0xff] %v853_v48  ;;  %v694_v51 = vadd.f32 %v693_v49, %v2249_v35  ;;  %v855_v52 = vadd.f32 %v854_v50, %v2252_v36 }
 0x171   : > { %v697_v55 = vpop.f32.mrf.mxu1  ;;  %v858_v33 = vpop.f32.mrf.mxu0 }
 0x172   : > { %1413 = vst [vmem:[%s2259_s28 + $0x88] sm:$0xff] %v694_v51  ;;  %1429 = vst [vmem:[%s2263_s30 + $0x88] sm:$0xff] %v855_v52  ;;  %v698_v43 = vadd.f32 %v697_v55, %v2239_v27  ;;  %v859_v53 = vadd.f32 %v858_v33, %v2242_v28 }
 0x173   : > { %v699_v56 = vpop.f32.mrf.mxu1  ;;  %v860_v57 = vpop.f32.mrf.mxu0 }
 0x174   : > { %975 = vst [vmem:[%s2259_s28 + $0x10] sm:$0xff] %v698_v43  ;;  %991 = vst [vmem:[%s2263_s30 + $0x10] sm:$0xff] %v859_v53  ;;  %v700_v58 = vadd.f32 %v699_v56, %v2249_v35  ;;  %v861_v59 = vadd.f32 %v860_v57, %v2252_v36 }
 0x175   : > { %v703_v60 = vpop.f32.mrf.mxu1  ;;  %v864_v61 = vpop.f32.mrf.mxu0 }
 0x176   : > { %1414 = vst [vmem:[%s2259_s28 + $0x90] sm:$0xff] %v700_v58  ;;  %1430 = vst [vmem:[%s2263_s30 + $0x90] sm:$0xff] %v861_v59  ;;  %v704_v62 = vadd.f32 %v703_v60, %v2239_v27  ;;  %v865_v63 = vadd.f32 %v864_v61, %v2242_v28 }
 0x177   : > { %v705_v1 = vpop.f32.mrf.mxu1  ;;  %v866_v2 = vpop.f32.mrf.mxu0 }
 0x178   : > { %976 = vst [vmem:[%s2259_s28 + $0x18] sm:$0xff] %v704_v62  ;;  %992 = vst [vmem:[%s2263_s30 + $0x18] sm:$0xff] %v865_v63  ;;  %v706_v3 = vadd.f32 %v705_v1, %v2249_v35  ;;  %v867_v4 = vadd.f32 %v866_v2, %v2252_v36 }
 0x179   : > { %v709_v5 = vpop.f32.mrf.mxu1  ;;  %v870_v6 = vpop.f32.mrf.mxu0 }
 0x17a   : > { %1415 = vst [vmem:[%s2259_s28 + $0x98] sm:$0xff] %v706_v3  ;;  %1431 = vst [vmem:[%s2263_s30 + $0x98] sm:$0xff] %v867_v4  ;;  %v710_v7 = vadd.f32 %v709_v5, %v2239_v27  ;;  %v871_v8 = vadd.f32 %v870_v6, %v2242_v28 }
 0x17b   : > { %v711_v9 = vpop.f32.mrf.mxu1  ;;  %v872_v10 = vpop.f32.mrf.mxu0 }
 0x17c   : > { %977 = vst [vmem:[%s2259_s28 + $0x20] sm:$0xff] %v710_v7  ;;  %993 = vst [vmem:[%s2263_s30 + $0x20] sm:$0xff] %v871_v8  ;;  %v712_v11 = vadd.f32 %v711_v9, %v2249_v35  ;;  %v873_v12 = vadd.f32 %v872_v10, %v2252_v36 }
 0x17d   : > { %v715_v13 = vpop.f32.mrf.mxu1  ;;  %v876_v14 = vpop.f32.mrf.mxu0 }
 0x17e   : > { %1416 = vst [vmem:[%s2259_s28 + $0xa0] sm:$0xff] %v712_v11  ;;  %1432 = vst [vmem:[%s2263_s30 + $0xa0] sm:$0xff] %v873_v12  ;;  %v716_v15 = vadd.f32 %v715_v13, %v2239_v27  ;;  %v877_v16 = vadd.f32 %v876_v14, %v2242_v28 }
 0x17f   : > { %v717_v17 = vpop.f32.mrf.mxu1  ;;  %v878_v18 = vpop.f32.mrf.mxu0 }
 0x180   : > { %978 = vst [vmem:[%s2259_s28 + $0x28] sm:$0xff] %v716_v15  ;;  %994 = vst [vmem:[%s2263_s30 + $0x28] sm:$0xff] %v877_v16  ;;  %v718_v19 = vadd.f32 %v717_v17, %v2249_v35  ;;  %v879_v20 = vadd.f32 %v878_v18, %v2252_v36 }
 0x181   : > { %v721_v21 = vpop.f32.mrf.mxu1  ;;  %v882_v22 = vpop.f32.mrf.mxu0 }
 0x182   : > { %1417 = vst [vmem:[%s2259_s28 + $0xa8] sm:$0xff] %v718_v19  ;;  %1433 = vst [vmem:[%s2263_s30 + $0xa8] sm:$0xff] %v879_v20  ;;  %v722_v23 = vadd.f32 %v721_v21, %v2239_v27  ;;  %v883_v24 = vadd.f32 %v882_v22, %v2242_v28 }
 0x183   : > { %v723_v25 = vpop.f32.mrf.mxu1  ;;  %v884_v26 = vpop.f32.mrf.mxu0 }
 0x184   : > { %979 = vst [vmem:[%s2259_s28 + $0x30] sm:$0xff] %v722_v23  ;;  %995 = vst [vmem:[%s2263_s30 + $0x30] sm:$0xff] %v883_v24  ;;  %v724_v29 = vadd.f32 %v723_v25, %v2249_v35  ;;  %v885_v30 = vadd.f32 %v884_v26, %v2252_v36 }
 0x185   : > { %v727_v31 = vpop.f32.mrf.mxu1  ;;  %v888_v54 = vpop.f32.mrf.mxu0 }
 0x186   : > { %1418 = vst [vmem:[%s2259_s28 + $0xb0] sm:$0xff] %v724_v29  ;;  %1434 = vst [vmem:[%s2263_s30 + $0xb0] sm:$0xff] %v885_v30  ;;  %v728_v34 = vadd.f32 %v727_v31, %v2239_v27  ;;  %v889_v32 = vadd.f32 %v888_v54, %v2242_v28 }
 0x187   : > { %v729_v37 = vpop.f32.mrf.mxu1  ;;  %v890_v38 = vpop.f32.mrf.mxu0 }
 0x188   : > { %980 = vst [vmem:[%s2259_s28 + $0x38] sm:$0xff] %v728_v34  ;;  %996 = vst [vmem:[%s2263_s30 + $0x38] sm:$0xff] %v889_v32  ;;  %v730_v39 = vadd.f32 %v729_v37, %v2249_v35  ;;  %v891_v40 = vadd.f32 %v890_v38, %v2252_v36 }
 0x189   : > { %v733_v0 = vpop.f32.mrf.mxu1  ;;  %v894_v41 = vpop.f32.mrf.mxu0 }
 0x18a   : > { %1419 = vst [vmem:[%s2259_s28 + $0xb8] sm:$0xff] %v730_v39  ;;  %1435 = vst [vmem:[%s2263_s30 + $0xb8] sm:$0xff] %v891_v40  ;;  %v734_v44 = vadd.f32 %v733_v0, %v2239_v27  ;;  %v895_v42 = vadd.f32 %v894_v41, %v2242_v28 }
 0x18b   : > { %v735_v45 = vpop.f32.mrf.mxu1  ;;  %v896_v46 = vpop.f32.mrf.mxu0 }
 0x18c   : > { %981 = vst [vmem:[%s2259_s28 + $0x40] sm:$0xff] %v734_v44  ;;  %997 = vst [vmem:[%s2263_s30 + $0x40] sm:$0xff] %v895_v42  ;;  %v736_v47 = vadd.f32 %v735_v45, %v2249_v35  ;;  %v897_v48 = vadd.f32 %v896_v46, %v2252_v36 }
 0x18d   : > { %v739_v49 = vpop.f32.mrf.mxu1  ;;  %v900_v50 = vpop.f32.mrf.mxu0 }
 0x18e   : > { %1420 = vst [vmem:[%s2259_s28 + $0xc0] sm:$0xff] %v736_v47  ;;  %1436 = vst [vmem:[%s2263_s30 + $0xc0] sm:$0xff] %v897_v48  ;;  %v740_v51 = vadd.f32 %v739_v49, %v2239_v27  ;;  %v901_v52 = vadd.f32 %v900_v50, %v2242_v28 }
 0x18f   : > { %v741_v55 = vpop.f32.mrf.mxu1  ;;  %v902_v33 = vpop.f32.mrf.mxu0 }
 0x190   : > { %982 = vst [vmem:[%s2259_s28 + $0x48] sm:$0xff] %v740_v51  ;;  %998 = vst [vmem:[%s2263_s30 + $0x48] sm:$0xff] %v901_v52  ;;  %v742_v43 = vadd.f32 %v741_v55, %v2249_v35  ;;  %v903_v53 = vadd.f32 %v902_v33, %v2252_v36 }
 0x191   : > { %v745_v56 = vpop.f32.mrf.mxu1  ;;  %v906_v57 = vpop.f32.mrf.mxu0 }
 0x192   : > { %1421 = vst [vmem:[%s2259_s28 + $0xc8] sm:$0xff] %v742_v43  ;;  %1437 = vst [vmem:[%s2263_s30 + $0xc8] sm:$0xff] %v903_v53  ;;  %v746_v58 = vadd.f32 %v745_v56, %v2239_v27  ;;  %v907_v59 = vadd.f32 %v906_v57, %v2242_v28 }
 0x193   : > { %v747_v60 = vpop.f32.mrf.mxu1  ;;  %v908_v61 = vpop.f32.mrf.mxu0 }
 0x194   : > { %983 = vst [vmem:[%s2259_s28 + $0x50] sm:$0xff] %v746_v58  ;;  %999 = vst [vmem:[%s2263_s30 + $0x50] sm:$0xff] %v907_v59  ;;  %v748_v62 = vadd.f32 %v747_v60, %v2249_v35  ;;  %v909_v63 = vadd.f32 %v908_v61, %v2252_v36 }
 0x195   : > { %v751_v1 = vpop.f32.mrf.mxu1  ;;  %v912_v2 = vpop.f32.mrf.mxu0 }
 0x196   : > { %1422 = vst [vmem:[%s2259_s28 + $0xd0] sm:$0xff] %v748_v62  ;;  %1438 = vst [vmem:[%s2263_s30 + $0xd0] sm:$0xff] %v909_v63  ;;  %v752_v3 = vadd.f32 %v751_v1, %v2239_v27  ;;  %v913_v4 = vadd.f32 %v912_v2, %v2242_v28 }
 0x197   : > { %v753_v5 = vpop.f32.mrf.mxu1  ;;  %v914_v6 = vpop.f32.mrf.mxu0 }
 0x198   : > { %984 = vst [vmem:[%s2259_s28 + $0x58] sm:$0xff] %v752_v3  ;;  %1000 = vst [vmem:[%s2263_s30 + $0x58] sm:$0xff] %v913_v4  ;;  %v754_v7 = vadd.f32 %v753_v5, %v2249_v35  ;;  %v915_v8 = vadd.f32 %v914_v6, %v2252_v36 }
 0x199   : > { %v757_v9 = vpop.f32.mrf.mxu1  ;;  %v918_v10 = vpop.f32.mrf.mxu0 }
 0x19a   : > { %1423 = vst [vmem:[%s2259_s28 + $0xd8] sm:$0xff] %v754_v7  ;;  %1439 = vst [vmem:[%s2263_s30 + $0xd8] sm:$0xff] %v915_v8  ;;  %v758_v11 = vadd.f32 %v757_v9, %v2239_v27  ;;  %v919_v12 = vadd.f32 %v918_v10, %v2242_v28 }
 0x19b   : > { %v759_v13 = vpop.f32.mrf.mxu1  ;;  %v920_v14 = vpop.f32.mrf.mxu0 }
 0x19c   : > { %985 = vst [vmem:[%s2259_s28 + $0x60] sm:$0xff] %v758_v11  ;;  %1001 = vst [vmem:[%s2263_s30 + $0x60] sm:$0xff] %v919_v12  ;;  %v760_v15 = vadd.f32 %v759_v13, %v2249_v35  ;;  %v921_v16 = vadd.f32 %v920_v14, %v2252_v36 }
 0x19d   : > { %v763_v17 = vpop.f32.mrf.mxu1  ;;  %v924_v18 = vpop.f32.mrf.mxu0 }
 0x19e   : > { %1424 = vst [vmem:[%s2259_s28 + $0xe0] sm:$0xff] %v760_v15  ;;  %1440 = vst [vmem:[%s2263_s30 + $0xe0] sm:$0xff] %v921_v16  ;;  %v764_v19 = vadd.f32 %v763_v17, %v2239_v27  ;;  %v925_v20 = vadd.f32 %v924_v18, %v2242_v28 }
 0x19f   : > { %v765_v21 = vpop.f32.mrf.mxu1  ;;  %v926_v22 = vpop.f32.mrf.mxu0 }
 0x1a0   : > { %986 = vst [vmem:[%s2259_s28 + $0x68] sm:$0xff] %v764_v19  ;;  %1002 = vst [vmem:[%s2263_s30 + $0x68] sm:$0xff] %v925_v20  ;;  %v766_v23 = vadd.f32 %v765_v21, %v2249_v35  ;;  %v927_v24 = vadd.f32 %v926_v22, %v2252_v36 }
 0x1a1   : > { %v769_v25 = vpop.f32.mrf.mxu1  ;;  %v930_v26 = vpop.f32.mrf.mxu0 }
 0x1a2   : > { %1425 = vst [vmem:[%s2259_s28 + $0xe8] sm:$0xff] %v766_v23  ;;  %1441 = vst [vmem:[%s2263_s30 + $0xe8] sm:$0xff] %v927_v24  ;;  %v770_v29 = vadd.f32 %v769_v25, %v2239_v27  ;;  %v931_v30 = vadd.f32 %v930_v26, %v2242_v28 }
 0x1a3   : > { %v771_v31 = vpop.f32.mrf.mxu1  ;;  %v932_v54 = vpop.f32.mrf.mxu0 }
 0x1a4   : > { %987 = vst [vmem:[%s2259_s28 + $0x70] sm:$0xff] %v770_v29  ;;  %1003 = vst [vmem:[%s2263_s30 + $0x70] sm:$0xff] %v931_v30  ;;  %v772_v34 = vadd.f32 %v771_v31, %v2249_v35  ;;  %v933_v32 = vadd.f32 %v932_v54, %v2252_v36 }
 0x1a5   : > { %v775_v37 = vpop.f32.mrf.mxu1  ;;  %v936_v38 = vpop.f32.mrf.mxu0 }
 0x1a6   : > { %1426 = vst [vmem:[%s2259_s28 + $0xf0] sm:$0xff] %v772_v34  ;;  %1442 = vst [vmem:[%s2263_s30 + $0xf0] sm:$0xff] %v933_v32  ;;  %v776_v39 = vadd.f32 %v775_v37, %v2239_v27  ;;  %v937_v40 = vadd.f32 %v936_v38, %v2242_v28 }
 0x1a7   : > { %v777_v0 = vpop.f32.mrf.mxu1  ;;  %v938_v41 = vpop.f32.mrf.mxu0 }
 0x1a8   : > { %988 = vst [vmem:[%s2259_s28 + $0x78] sm:$0xff] %v776_v39  ;;  %1004 = vst [vmem:[%s2263_s30 + $0x78] sm:$0xff] %v937_v40  ;;  %v778_v44 = vadd.f32 %v777_v0, %v2249_v35  ;;  %v939_v42 = vadd.f32 %v938_v41, %v2252_v36 }
 0x1aa   : > { %1427 = vst [vmem:[%s2259_s28 + $0xf8] sm:$0xff] %v778_v44  ;;  %1443 = vst [vmem:[%s2263_s30 + $0xf8] sm:$0xff] %v939_v42 }
 0x1ab   : > { %s1447_s6 = sshll.u32 %s1789_s22, 4  ;;  %s1448_s11 = sshll.u32 %s1785_s21, 6 }
 0x1ac   : > { %s1095_s14 = sadd.s32 %s1448_s11, %s1447_s6  ;;  %s1108_s1 = sshll.u32 %s2178_s4, 4  ;;  %s1109_s1 = int_to_ptr.vmem [resolvable:$true] %s1108_s1 }
 0x1ad   : > { %s2398_s27 = sshll.u32 %s1095_s14, 7  ;;  %s2519_s5 = sld [smem:[#allocation27_spill]] }
 0x1ae   : > { %s1811_s29 = smov 2048   ;;  %s1812_s12 = smov 4096  }
 0x1af   : > { %1500 = sst [smem:[#allocation13]] (%p1971_p7), %s1811_s29  ;;  %s1813_s22 = smov 16  }
 0x1b0   : > { %1501 = sst [smem:[#allocation13 + $0x1]] (%p1971_p7), %s1812_s12  ;;  %s1814_s21 = smov 128  }
 0x1b1   : > { %1502 = sst [smem:[#allocation13 + $0x2]] (%p1971_p7), %s1813_s22  ;;  %s1815_s13 = smov 8  }
 0x1b2   : > { %1503 = sst [smem:[#allocation13 + $0x3]] (%p1971_p7), %s1814_s21  ;;  %s1816_s15 = smov 131072  }
 0x1b3   : > { %s1097_s18 = scalar_lea.hbm %s2519_s5, %s2398_s27  ;;  %1504 = sst [smem:[#allocation13 + $0x4]] (%p1971_p7), %s1814_s21 }
 0x1b4   : > { %1505 = sst [smem:[#allocation13 + $0x5]] (%p1971_p7), %s1815_s13  ;;  %s1817_s2 = smov 0  }
 0x1b5   : > { %1506 = dma.general (%p1971_p7), %s1109_s1, 4096, %s1097_s18, %s1073_s16, %s1816_s15, [#allocation13], %s1817_s2, 0  }
 0x1b6   : > { %s2520_s6 = sld [smem:[#allocation28_spill]]  ;;  %s1149_s14 = sshll.u32 %s2259_s28, 4  ;;  %s1150_s14 = int_to_ptr.vmem [resolvable:$true] %s1149_s14 }
 0x1b7   : > { %s1818_s26 = smov 2048   ;;  %s1819_s16 = smov 4096  }
 0x1b8   : > { %1507 = sst [smem:[#allocation15]] (%p1971_p7), %s1818_s26  ;;  %s1820_s1 = smov 16  }
 0x1b9   : > { %1508 = sst [smem:[#allocation15 + $0x1]] (%p1971_p7), %s1819_s16  ;;  %s1821_s8 = smov 128  }
 0x1ba   : > { %1509 = sst [smem:[#allocation15 + $0x2]] (%p1971_p7), %s1820_s1  ;;  %s1822_s5 = smov 8  }
 0x1bb   : > { %1510 = sst [smem:[#allocation15 + $0x3]] (%p1971_p7), %s1821_s8  ;;  %s1823_s18 = smov 131072  }
 0x1bc   : > { %s1138_s11 = scalar_lea.hbm %s2520_s6, %s2398_s27  ;;  %1511 = sst [smem:[#allocation15 + $0x4]] (%p1971_p7), %s1821_s8 }
 0x1bd   : > { %1512 = sst [smem:[#allocation15 + $0x5]] (%p1971_p7), %s1822_s5  ;;  %s1824_s28 = smov 0  }
 0x1be   : > { %1513 = dma.general (%p1971_p7), %s1150_s14, 4096, %s1138_s11, %s2393_s17, %s1823_s18, [#allocation15], %s1824_s28, 0  }
 0x1bf   : > { %s2521_s22 = sld [smem:[#allocation29_spill]]  ;;  %s1190_s13 = sshll.u32 %s2263_s30, 4  ;;  %s1191_s13 = int_to_ptr.vmem [resolvable:$true] %s1190_s13 }
 0x1c0   : > { %s1825_s15 = smov 2048   ;;  %s1826_s2 = smov 4096  }
 0x1c1   : > { %1514 = sst [smem:[#allocation17]] (%p1971_p7), %s1825_s15  ;;  %s1827_s3 = smov 16  }
 0x1c2   : > { %1515 = sst [smem:[#allocation17 + $0x1]] (%p1971_p7), %s1826_s2  ;;  %s1828_s4 = smov 128  }
 0x1c3   : > { %1516 = sst [smem:[#allocation17 + $0x2]] (%p1971_p7), %s1827_s3  ;;  %s1829_s6 = smov 8  }
 0x1c4   : > { %1517 = sst [smem:[#allocation17 + $0x3]] (%p1971_p7), %s1828_s4  ;;  %s1831_s30 = smov 0  }
 0x1c5   : > { %s1179_s21 = scalar_lea.hbm %s2521_s22, %s2398_s27  ;;  %1518 = sst [smem:[#allocation17 + $0x4]] (%p1971_p7), %s1828_s4 }
 0x1c6   : > { %1519 = sst [smem:[#allocation17 + $0x5]] (%p1971_p7), %s1829_s6  ;;  %s1830_s27 = smov 131072  }
 0x1c7   : > { %1520 = dma.general (%p1971_p7), %s1191_s13, 4096, %s1179_s21, %s2393_s17, %s1830_s27, [#allocation17], %s1831_s30, 0  }
 0x1c8 PF: > { %s2522_s11 = sld [smem:[#allocation22_spill]]  ;;  %p1550_p4 = scmp.ge.s32.totalorder %s1801_s25, 2 }
 0x1c9   : > { %s2523_s14 = sld [smem:[#allocation23_spill]] }
 0x1ce   : > { %s1218_s26 = sand.u32 1, %s2522_s11  }
 0x1cf   : > { %p2524_p9 = scmp.ne.s32.totalorder %s2523_s14, 0  ;;  %s1219_s16 = scalar_lea.sflag [#allocation4], %s1218_s26 }
 0x1d1   : > { %p1536_p13 = pnand %p1550_p4, %p2524_p9 }
 0x1d3   : > { %p1537_p3 = pneg %p1536_p13 }
 0x1d5   : > { %1764 = dma.done.wait (%p1537_p3), %s1219_s16, 4096  }
 0x1d6   : > { %1766 = vsyncadd (%p1537_p3), %s1219_s16, 4294963200  ;;  %s2525_s1 = sadd.s32 4294967294, %s1801_s25  }
 0x1d7   : > { %s1227_s8 = sand.u32 1, %s2525_s1  }
 0x1d8   : > { %s1228_s5 = scalar_lea.sflag [#allocation10], %s1227_s8 }
 0x1d9   : > { %1768 = dma.done.wait (%p1537_p3), %s1228_s5, 8192  }
 0x1da   : > { %1770 = vsyncadd (%p1537_p3), %s1228_s5, 4294959104  ;;  %s26_s25 = sadd.s32 1, %s1801_s25   ;;  %s2526_s10 = sld [smem:[#allocation24_spill]] }
 0x1db   : > { %p23_p7 = scmp.ge.s32.totalorder %s26_s25, 6   ;;  %s2527_s18 = smov %s1777_s19 }
 0x1dc   : > { %s2528_s19 = smov %s1781_s20  ;;  %s2529_s20 = smov %s1984_s7 }
 0x1dd   : > { %s2530_s21 = smov %s1793_s23  ;;  %s2531_s22 = smov %s1797_s24 }
 0x1de   : > { %s2533_s24 = smov %s2539_s9  ;;  %25 = sbr.rel (!%p23_p7) target bundleno = 16 (0x10), region = 135 }
 0x1e0   : > { %s2532_s23 = smov %s2526_s10 }
 0x1e3   :  { %1242 = vsyncpa [#allocation3], 1 }
 0x1e4   :  { %1244 = vsyncpa [#allocation3 + $0x1], 1 }
 0x1e5   :  { %1245 = vsyncpa [#allocation6], 1 }
 0x1e6   :  { %1246 = vsyncpa [#allocation4], 1 }
 0x1e7   :  { %1248 = vsyncpa [#allocation4 + $0x1], 1 }
 0x1e8   :  { %1249 = vsyncpa [#allocation10], 1 }
 0x1e9   :  { %1251 = vsyncpa [#allocation10 + $0x1], 1 }

</bundles_post_ra>
